<compile_context>
chip_gen: v7x
topology: tpu7x:2x2x1
jax: 0.10.0
libtpu: 0.0.40
codegen_flags: <defaults>
</compile_context>

<pallas_src>
import math
from functools import partial

import jax
import jax.numpy as jnp
from jax import lax
from jax.experimental import pallas as pl
from jax.experimental.pallas import tpu as pltpu

_EPS = 1e-5
_PARALLEL1 = pltpu.CompilerParams(dimension_semantics=("parallel",))
_PARALLEL2 = pltpu.CompilerParams(dimension_semantics=("parallel", "parallel"))


def _round_up(x, m):
    return ((x + m - 1) // m) * m


def _row_tile(m, target):
    """Row tile (multiple of 8) + padded row count. grid = padded // tile, multi-step for
    realistic row counts so the DMA pipeline / both v7x TensorCores actually engage."""
    tile = min(_round_up(m, 8), target)          # target is a multiple of 8
    return tile, _round_up(m, tile)


def _hw_tile(hw, target=2048):
    """Largest multiple-of-128 divisor of hw (<= target); falls back to the full extent."""
    # TODO(synk): production 200x200 BEV (hw=40000) has no 128-multiple divisor; pad hw or
    # tile over the spatial H axis there.
    best = None
    t = 128
    while t <= min(hw, target):
        if hw % t == 0:
            best = t
        t += 128
    return best if best is not None else hw


def _full1(shape):
    n = len(shape)
    return pl.BlockSpec(shape, lambda i, _n=n: (0,) * _n)


def _full2(shape):
    n = len(shape)
    return pl.BlockSpec(shape, lambda i, j, _n=n: (0,) * _n)


def _bf16(x):
    return x.astype(jnp.bfloat16)


# --------------------------------------------------------------------------------------
# Kernel A: self-attn + residual + norm1 + fused [offsets | softmax(weights)] projection
# --------------------------------------------------------------------------------------
def _sa_norm1_proj_kernel(q_ref, pos_ref, wqk_ref, bqk_ref, wv_ref, bv_ref,
                          wo_ref, bo_ref, g1_ref, bt1_ref, wproj_ref, bproj_ref,
                          q1_ref, proj_ref, *, H, P, eps):
    B, Tn, C = q_ref.shape
    D = C // H
    HP2, HP = H * P * 2, H * P
    Fpad = proj_ref.shape[2]
    scale = 1.0 / math.sqrt(D)

    query = q_ref[...]
    pos = pos_ref[...]
    res = query.reshape(B * Tn, C)                      # MHA value rows / residual
    pos_rows = pos.reshape(B * Tn, C)
    xqk = res + pos_rows                                # q = k = query + query_pos

    # fused Q|K projection (one (C,2C) MXU matmul), V projection - bf16 operands, f32 accum
    qk = jnp.dot(_bf16(xqk), wqk_ref[...], preferred_element_type=jnp.float32) + bqk_ref[...]
    v = jnp.dot(_bf16(res), wv_ref[...], preferred_element_type=jnp.float32) + bv_ref[...]

    q3 = (qk[:, :C] * scale).reshape(B, Tn, C)
    k3 = qk[:, C:].reshape(B, Tn, C)
    v3 = v.reshape(B, Tn, C)

    # block-diagonal head masks: per-head lane reduction / expansion on the MXU, keeping the
    # lane-dense (rows, C) layout (no (B,Tn,H,D) relayouts, no XLU reduces over sparse vregs)
    cid = lax.broadcasted_iota(jnp.int32, (C, H), 0)
    hid = lax.broadcasted_iota(jnp.int32, (C, H), 1)
    hmask = jnp.logical_and(cid >= hid * D, cid < (hid + 1) * D).astype(jnp.bfloat16)
    cid_t = lax.broadcasted_iota(jnp.int32, (H, C), 1)
    hid_t = lax.broadcasted_iota(jnp.int32, (H, C), 0)
    hmask_t = jnp.logical_and(cid_t >= hid_t * D, cid_t < (hid_t + 1) * D).astype(jnp.bfloat16)

    # batch_first=False MHA: attention couples the tiny B axis, batched over (n, h).
    prod = (q3[:, None, :, :] * k3[None, :, :, :]).reshape(B * B * Tn, C)
    scores = jnp.dot(_bf16(prod), hmask,
                     preferred_element_type=jnp.float32).reshape(B, B, Tn, H)
    scores = scores - jnp.max(scores, axis=1, keepdims=True)
    e = jnp.exp(scores)
    attn = e * pl.reciprocal(jnp.sum(e, axis=1, keepdims=True), approx=True)
    attn_full = jnp.dot(_bf16(attn.reshape(B * B * Tn, H)), hmask_t,
                        preferred_element_type=jnp.float32).reshape(B, B, Tn, C)
    ctx = jnp.sum(attn_full * v3[None, :, :, :], axis=1)           # (B, Tn, C)

    attn_out = jnp.dot(_bf16(ctx.reshape(B * Tn, C)), wo_ref[...],
                       preferred_element_type=jnp.float32) + bo_ref[...]

    # residual + LayerNorm (norm1)
    z = res + attn_out
    mu = jnp.mean(z, axis=-1, keepdims=True)
    zc = z - mu
    var = jnp.mean(zc * zc, axis=-1, keepdims=True)
    q1 = zc * lax.rsqrt(var + eps) * g1_ref[...] + bt1_ref[...]
    q1_ref[...] = q1.reshape(B, Tn, C).astype(q1_ref.dtype)

    # fused MSDeformAttn projection epilogue: (norm1_out + pos) -> offsets | softmax(weights)
    y = jnp.dot(_bf16(q1 + pos_rows), wproj_ref[...],
                preferred_element_type=jnp.float32) + bproj_ref[...]
    aw = y[:, HP2:HP2 + HP].reshape(B * Tn, H, P)
    aw = aw - jnp.max(aw, axis=-1, keepdims=True)
    ea = jnp.exp(aw)
    aw = ea * pl.reciprocal(jnp.sum(ea, axis=-1, keepdims=True), approx=True)
    parts = [y[:, :HP2], aw.reshape(B * Tn, HP)]
    if Fpad > HP2 + HP:
        parts.append(y[:, HP2 + HP:])
    # compose in registers, ONE full-width lane-dense store (no masked partial overwrite)
    proj_ref[...] = jnp.concatenate(parts, axis=-1).reshape(B, Tn, Fpad)


def _sa_norm1_proj_call(query, query_pos, p, H, P):
    B, N, C = query.shape
    Fpad = p['ca_wproj'].shape[1]
    tn, npad = _row_tile(N, 256)
    if npad != N:
        pad = ((0, 0), (0, npad - N), (0, 0))
        query = jnp.pad(query, pad)
        query_pos = jnp.pad(query_pos, pad)
    q_spec = pl.BlockSpec((B, tn, C), lambda i: (0, i, 0))
    proj_spec = pl.BlockSpec((B, tn, Fpad), lambda i: (0, i, 0))
    kern = partial(_sa_norm1_proj_kernel, H=H, P=P, eps=_EPS)
    q1, proj = pl.pallas_call(
        kern,
        grid=(npad // tn,),
        out_shape=(jax.ShapeDtypeStruct((B, npad, C), jnp.bfloat16),
                   jax.ShapeDtypeStruct((B, npad, Fpad), jnp.float32)),
        in_specs=[q_spec, q_spec,
                  _full1(p['sa_wqk'].shape), _full1(p['sa_bqk'].shape),
                  _full1(p['sa_wv'].shape), _full1(p['sa_bv'].shape),
                  _full1(p['sa_wo'].shape), _full1(p['sa_bo'].shape),
                  _full1(p['ln1_g'].shape), _full1(p['ln1_b'].shape),
                  _full1(p['ca_wproj'].shape), _full1(p['ca_bproj'].shape)],
        out_specs=(q_spec, proj_spec),
        compiler_params=_PARALLEL1,
    )(query, query_pos, p['sa_wqk'], p['sa_bqk'], p['sa_wv'], p['sa_bv'],
      p['sa_wo'], p['sa_bo'], p['ln1_g'], p['ln1_b'], p['ca_wproj'], p['ca_bproj'])
    if npad != N:
        q1, proj = q1[:, :N], proj[:, :N]
    return q1, proj


# --------------------------------------------------------------------------------------
# Kernel B: value_proj fused with the NCHW -> (HW, C) transpose (transpose done in VMEM)
# --------------------------------------------------------------------------------------
def _value_proj_kernel(x_ref, w_ref, b_ref, o_ref):
    x = x_ref[0]                                        # (C, hw_tile) slab in native NCHW layout
    y = jnp.dot(_bf16(x.T), w_ref[...],                 # per-tile VMEM transpose, no HBM pass
                preferred_element_type=jnp.float32) + b_ref[...]
    o_ref[0] = y.astype(o_ref.dtype)


def _value_proj_call(value_bc_hw, w, b):
    B, C, HW = value_bc_hw.shape
    cout = w.shape[1]
    t = _hw_tile(HW)
    return pl.pallas_call(
        _value_proj_kernel,
        grid=(B, HW // t),
        out_shape=jax.ShapeDtypeStruct((B, HW, cout), jnp.bfloat16),
        in_specs=[pl.BlockSpec((1, C, t), lambda bi, i: (bi, 0, i)),
                  _full2(w.shape), _full2(b.shape)],
        out_specs=pl.BlockSpec((1, t, cout), lambda bi, i: (bi, i, 0)),
        compiler_params=_PARALLEL2,
    )(value_bc_hw, w, b)


# --------------------------------------------------------------------------------------
# Kernel C: collapsed output_proj∘mlp_out + residual + norm2 + FFN(+identity) + norm3
# --------------------------------------------------------------------------------------
def _cross_ffn_kernel(agg_ref, res_ref, wom_ref, bom_ref, g2_ref, bt2_ref,
                      w1_ref, b1_ref, w2_ref, b2_ref, g3_ref, bt3_ref, o_ref, *, eps):
    y = jnp.dot(_bf16(agg_ref[...]), wom_ref[...],
                preferred_element_type=jnp.float32) + bom_ref[...]
    z = res_ref[...].astype(jnp.float32) + y            # SADefnAttn residual (dropout=identity)
    mu = jnp.mean(z, axis=-1, keepdims=True)
    zc = z - mu
    var = jnp.mean(zc * zc, axis=-1, keepdims=True)
    q2 = zc * lax.rsqrt(var + eps) * g2_ref[...] + bt2_ref[...]     # norm2

    h = jnp.maximum(jnp.dot(_bf16(q2), w1_ref[...],
                            preferred_element_type=jnp.float32) + b1_ref[...], 0.0)
    f = jnp.dot(_bf16(h), w2_ref[...],
                preferred_element_type=jnp.float32) + b2_ref[...]
    z3 = q2 + f                                         # add_identity=True
    mu3 = jnp.mean(z3, axis=-1, keepdims=True)
    zc3 = z3 - mu3
    var3 = jnp.mean(zc3 * zc3, axis=-1, keepdims=True)
    o_ref[...] = zc3 * lax.rsqrt(var3 + eps) * g3_ref[...] + bt3_ref[...]   # norm3


def _cross_ffn_call(agg_rows, res_rows, p):
    M, C = agg_rows.shape
    tm, mpad = _row_tile(M, 512)
    if mpad != M:
        agg_rows = jnp.pad(agg_rows, ((0, mpad - M), (0, 0)))
        res_rows = jnp.pad(res_rows, ((0, mpad - M), (0, 0)))
    row_spec = pl.BlockSpec((tm, C), lambda i: (i, 0))
    kern = partial(_cross_ffn_kernel, eps=_EPS)
    out = pl.pallas_call(
        kern,
        grid=(mpad // tm,),
        out_shape=jax.ShapeDtypeStruct((mpad, C), jnp.float32),
        in_specs=[row_spec, row_spec,
                  _full1(p['w_om'].shape), _full1(p['b_om'].shape),
                  _full1(p['ln2_g'].shape), _full1(p['ln2_b'].shape),
                  _full1(p['ffn_w1'].shape), _full1(p['ffn_b1'].shape),
                  _full1(p['ffn_w2'].shape), _full1(p['ffn_b2'].shape),
                  _full1(p['ln3_g'].shape), _full1(p['ln3_b'].shape)],
        out_specs=row_spec,
        compiler_params=_PARALLEL1,
    )(agg_rows, res_rows, p['w_om'], p['b_om'], p['ln2_g'], p['ln2_b'],
      p['ffn_w1'], p['ffn_b1'], p['ffn_w2'], p['ffn_b2'], p['ln3_g'], p['ln3_b'])
    return out if mpad == M else out[:M]


# --------------------------------------------------------------------------------------
# Plain-JAX glue: F.grid_sample-style bilinear gather (align_corners=False, zeros padding)
# with the softmaxed attention weights folded into the corner weights + point sum here.
# --------------------------------------------------------------------------------------
def _bilinear_gather_agg(v_proj, locs, attw, Hs, Ws):
    # v_proj: (B, HW, H, D) bf16 (lane-dense view, no transpose copy)
    # locs:   (B, N, H, P, 2) f32 ; attw: (B, N, H, P) f32 (already softmaxed)
    # returns agg: (B, N, H*D) f32 -- only this (B, N, C) aggregate round-trips HBM.
    # TODO(synk): data-dependent gather stays in plain JAX; a Pallas version needs manual
    # per-tile DMA (pl.ANY + pltpu.make_async_copy) of the value map.
    B, HW, H, D = v_proj.shape
    _, N, _, P, _ = locs.shape
    x = locs[..., 0] * Ws - 0.5
    y = locs[..., 1] * Hs - 0.5
    x0 = jnp.floor(x)
    y0 = jnp.floor(y)
    dx = x - x0
    dy = y - y0
    xs = jnp.stack([x0, x0 + 1.0, x0, x0 + 1.0], axis=1)               # (B, 4, N, H, P)
    ys = jnp.stack([y0, y0, y0 + 1.0, y0 + 1.0], axis=1)
    ws = jnp.stack([(1 - dx) * (1 - dy), dx * (1 - dy),
                    (1 - dx) * dy, dx * dy], axis=1)
    valid = ((xs >= 0) & (xs <= Ws - 1) & (ys >= 0) & (ys <= Hs - 1)).astype(jnp.float32)
    cw = ws * valid * attw[:, None]                                    # fold attn weights
    xi = jnp.clip(xs, 0, Ws - 1).astype(jnp.int32)
    yi = jnp.clip(ys, 0, Hs - 1).astype(jnp.int32)
    idx = yi * Ws + xi                                                 # (B, 4, N, H, P)
    idx_g = jnp.transpose(idx, (0, 1, 2, 4, 3)).reshape(B, 4 * N * P, H)
    g = jnp.take_along_axis(v_proj, idx_g[..., None], axis=1)          # (B, 4NP, H, D)
    g = g.reshape(B, 4, N, P, H, D)
    w = jnp.transpose(cw, (0, 1, 2, 4, 3))                             # (B, 4, N, P, H)
    agg = jnp.sum(g * w[..., None], axis=(1, 3))                       # (B, N, H, D) f32
    return agg.reshape(B, N, H * D)


# --------------------------------------------------------------------------------------
# Full forward pass of DetectionTransformerDecoderLayer
# --------------------------------------------------------------------------------------
@partial(jax.jit, static_argnames=('nheads', 'n_points'))
def decoder_layer_forward(params, query, query_pos, value, reference_points,
                          *, nheads, n_points):
    p = params
    B, N, C = query.shape
    H, P = nheads, n_points
    D = C // H
    HP2, HP = H * P * 2, H * P

    # 1) self-attention + residual + norm1, fused with the deformable offsets/weights proj
    q1, proj = _sa_norm1_proj_call(query, query_pos, p, H, P)          # bf16 / f32

    # 2) value_proj fused with the NCHW -> (HW, C) transpose (reshape is layout-free)
    Hs, Ws = value.shape[2], value.shape[3]
    vproj = _value_proj_call(value.reshape(B, C, Hs * Ws), p['ca_wv'], p['ca_bv'])
    v_proj = vproj.reshape(B, Hs * Ws, H, D)                           # layout-preserving view

    # 3) sampling locations + bilinear gather (attention weights folded, points summed)
    off = proj[..., :HP2].reshape(B, N, H, P, 2)
    attw = proj[..., HP2:HP2 + HP].reshape(B, N, H, P)
    ref = reference_points[:, :, 0, :]                                 # (B, N, 2), n_levels=1
    # TODO(synk): reference hardcodes input_spatial_shapes=[[200, 200]]; we normalize by the
    # actual value spatial shape so sampling stays well defined at test sizes.
    normalizer = jnp.array([Ws, Hs], jnp.float32)                      # (W, H) like MSDeformAttn
    locs = ref[:, :, None, None, :] + off / normalizer                 # (B, N, H, P, 2)
    agg = _bilinear_gather_agg(v_proj, locs, attw, Hs, Ws)             # (B, N, C) f32

    # 4) collapsed output_proj∘mlp_out + residual + norm2 + FFN(+identity) + norm3
    out_rows = _cross_ffn_call(agg.reshape(B * N, C), q1.reshape(B * N, C), p)
    return out_rows.reshape(B, N, C)


# --------------------------------------------------------------------------------------
# Deterministic parameter init - already kernel-ready (all per-call prep hoisted here):
#  * matmul weights pre-cast to bf16 (biases / LN params stay f32)
#  * [offsets | weights] projection pre-padded to a 128-lane multiple
#  * output_proj followed by mlp_out (no nonlinearity between) collapsed into one affine map
# --------------------------------------------------------------------------------------
def init_params(key, C, nheads, n_points):
    H, P = nheads, n_points
    keys = jax.random.split(key, 9)

    def lin(k, fin, fout, scale=0.05):
        kw, kb = jax.random.split(k)
        return (scale * jax.random.normal(kw, (fin, fout), jnp.float32),
                scale * jax.random.normal(kb, (1, fout), jnp.float32))

    sa_wqk, sa_bqk = lin(keys[0], C, 2 * C)        # nn.MultiheadAttention fused Q|K proj
    sa_wv, sa_bv = lin(keys[1], C, C)
    sa_wo, sa_bo = lin(keys[2], C, C)
    ca_wv, ca_bv = lin(keys[3], C, C)              # MSDeformAttn value_proj
    ca_wproj, ca_bproj = lin(keys[4], C, H * P * 3)  # [sampling_offsets | attention_weights]
    ca_wout, ca_bout = lin(keys[5], C, C)          # MSDeformAttn output_proj
    ca_wmlp, ca_bmlp = lin(keys[6], C, C)          # SADefnAttn mlp_out
    ffn_w1, ffn_b1 = lin(keys[7], C, 2 * C)
    ffn_w2, ffn_b2 = lin(keys[8], 2 * C, C)

    F = H * P * 3
    Fpad = _round_up(F, 128)
    ca_wproj = jnp.pad(ca_wproj, ((0, 0), (0, Fpad - F)))
    ca_bproj = jnp.pad(ca_bproj, ((0, 0), (0, Fpad - F)))
    w_om = ca_wout @ ca_wmlp                       # exact collapse (no nonlinearity between)
    b_om = ca_bout @ ca_wmlp + ca_bmlp

    bf = lambda w: w.astype(jnp.bfloat16)
    p = {
        'sa_wqk': bf(sa_wqk), 'sa_bqk': sa_bqk,
        'sa_wv': bf(sa_wv), 'sa_bv': sa_bv,
        'sa_wo': bf(sa_wo), 'sa_bo': sa_bo,
        'ca_wv': bf(ca_wv), 'ca_bv': ca_bv,
        'ca_wproj': bf(ca_wproj), 'ca_bproj': ca_bproj,
        'w_om': bf(w_om), 'b_om': b_om,
        'ffn_w1': bf(ffn_w1), 'ffn_b1': ffn_b1,
        'ffn_w2': bf(ffn_w2), 'ffn_b2': ffn_b2,
    }
    for name in ('ln1', 'ln2', 'ln3'):
        p[name + '_g'] = jnp.ones((1, C), jnp.float32)
        p[name + '_b'] = jnp.zeros((1, C), jnp.float32)
    return p


if __name__ == "__main__":
    B, N, C = 2, 8, 32          # batch, num_query, embed_dims
    nheads, n_points = 4, 8
    Hs = Ws = 16                # BEV value spatial size (small test stand-in for 200x200)

    key = jax.random.PRNGKey(0)
    k1, k2, k3, k4, kp = jax.random.split(key, 5)
    query = jax.random.normal(k1, (B, N, C), jnp.float32)
    query_pos = jax.random.normal(k2, (B, N, C), jnp.float32)
    value = jax.random.normal(k3, (B, C, Hs, Ws), jnp.float32)       # NCHW like PyTorch
    reference_points = jax.random.uniform(k4, (B, N, 1, 2), jnp.float32)

    params = init_params(kp, C, nheads, n_points)
    out = decoder_layer_forward(params, query, query_pos, value, reference_points,
                                nheads=nheads, n_points=n_points)
    jax.block_until_ready(out)
    assert out.shape == (B, N, C)
    assert bool(jnp.all(jnp.isfinite(out)))
    print("KERNEL_OK")
</pallas_src>

<mosaic_0001>
module attributes {stable_mosaic.version = 11 : i64} {
  func.func @_sa_norm1_proj_kernel(%arg0: i32, %arg1: memref<2x8x32xf32, #tpu.memory_space<vmem>>, %arg2: memref<2x8x32xf32, #tpu.memory_space<vmem>>, %arg3: memref<32x64xbf16, #tpu.memory_space<vmem>>, %arg4: memref<1x64xf32, #tpu.memory_space<vmem>>, %arg5: memref<32x32xbf16, #tpu.memory_space<vmem>>, %arg6: memref<1x32xf32, #tpu.memory_space<vmem>>, %arg7: memref<32x32xbf16, #tpu.memory_space<vmem>>, %arg8: memref<1x32xf32, #tpu.memory_space<vmem>>, %arg9: memref<1x32xf32, #tpu.memory_space<vmem>>, %arg10: memref<1x32xf32, #tpu.memory_space<vmem>>, %arg11: memref<32x128xbf16, #tpu.memory_space<vmem>>, %arg12: memref<1x128xf32, #tpu.memory_space<vmem>>, %arg13: memref<2x8x32xbf16, #tpu.memory_space<vmem>>, %arg14: memref<2x8x128xf32, #tpu.memory_space<vmem>>) attributes {dimension_semantics = [#tpu.dimension_semantics<parallel>], iteration_bounds = array<i64: 1>, scalar_prefetch = 0 : i64, scratch_operands = 0 : i64, tpu.core_type = #tpu.core_type<tc>, window_params = [{transform_indices = @transform_0, window_bounds = array<i64: 2, 8, 32>}, {transform_indices = @transform_1, window_bounds = array<i64: 2, 8, 32>}, {pipeline_mode = #tpu.pipeline_mode<synchronous>, transform_indices = @transform_2, window_bounds = array<i64: 32, 64>}, {pipeline_mode = #tpu.pipeline_mode<synchronous>, transform_indices = @transform_3, window_bounds = array<i64: 1, 64>}, {pipeline_mode = #tpu.pipeline_mode<synchronous>, transform_indices = @transform_4, window_bounds = array<i64: 32, 32>}, {pipeline_mode = #tpu.pipeline_mode<synchronous>, transform_indices = @transform_5, window_bounds = array<i64: 1, 32>}, {pipeline_mode = #tpu.pipeline_mode<synchronous>, transform_indices = @transform_6, window_bounds = array<i64: 32, 32>}, {pipeline_mode = #tpu.pipeline_mode<synchronous>, transform_indices = @transform_7, window_bounds = array<i64: 1, 32>}, {pipeline_mode = #tpu.pipeline_mode<synchronous>, transform_indices = @transform_8, window_bounds = array<i64: 1, 32>}, {pipeline_mode = #tpu.pipeline_mode<synchronous>, transform_indices = @transform_9, window_bounds = array<i64: 1, 32>}, {pipeline_mode = #tpu.pipeline_mode<synchronous>, transform_indices = @transform_10, window_bounds = array<i64: 32, 128>}, {pipeline_mode = #tpu.pipeline_mode<synchronous>, transform_indices = @transform_11, window_bounds = array<i64: 1, 128>}, {transform_indices = @transform_12, window_bounds = array<i64: 2, 8, 32>}, {transform_indices = @transform_13, window_bounds = array<i64: 2, 8, 128>}]} {
    %c0 = arith.constant 0 : index
    %c0_0 = arith.constant 0 : index
    %c0_1 = arith.constant 0 : index
    %0 = vector.load %arg1[%c0, %c0_0, %c0_1] : memref<2x8x32xf32, #tpu.memory_space<vmem>>, vector<2x8x32xf32>
    %c0_2 = arith.constant 0 : index
    %c0_3 = arith.constant 0 : index
    %c0_4 = arith.constant 0 : index
    %1 = vector.load %arg2[%c0_2, %c0_3, %c0_4] : memref<2x8x32xf32, #tpu.memory_space<vmem>>, vector<2x8x32xf32>
    %2 = vector.shape_cast %0 : vector<2x8x32xf32> to vector<16x32xf32>
    %3 = vector.shape_cast %1 : vector<2x8x32xf32> to vector<16x32xf32>
    %4 = arith.addf %2, %3 : vector<16x32xf32>
    %5 = arith.truncf %4 : vector<16x32xf32> to vector<16x32xbf16>
    %c0_5 = arith.constant 0 : index
    %c0_6 = arith.constant 0 : index
    %6 = vector.load %arg3[%c0_5, %c0_6] : memref<32x64xbf16, #tpu.memory_space<vmem>>, vector<32x64xbf16>
    %cst = arith.constant dense<0.000000e+00> : vector<16x64xf32>
    %7 = tpu.matmul %5, %6, %cst {dimension_numbers = #tpu.dot_dimension_numbers<[1], [0], [0], [1], [0, 0, 1, 1], [], []>} : vector<16x32xbf16>, vector<32x64xbf16>, vector<16x64xf32> -> vector<16x64xf32>
    %c0_7 = arith.constant 0 : index
    %c0_8 = arith.constant 0 : index
    %8 = vector.load %arg4[%c0_7, %c0_8] : memref<1x64xf32, #tpu.memory_space<vmem>>, vector<1x64xf32>
    %9 = vector.broadcast %8 : vector<1x64xf32> to vector<16x64xf32>
    %10 = arith.addf %7, %9 : vector<16x64xf32>
    %11 = arith.truncf %2 : vector<16x32xf32> to vector<16x32xbf16>
    %c0_9 = arith.constant 0 : index
    %c0_10 = arith.constant 0 : index
    %12 = vector.load %arg5[%c0_9, %c0_10] : memref<32x32xbf16, #tpu.memory_space<vmem>>, vector<32x32xbf16>
    %cst_11 = arith.constant dense<0.000000e+00> : vector<16x32xf32>
    %13 = tpu.matmul %11, %12, %cst_11 {dimension_numbers = #tpu.dot_dimension_numbers<[1], [0], [0], [1], [0, 0, 1, 1], [], []>} : vector<16x32xbf16>, vector<32x32xbf16>, vector<16x32xf32> -> vector<16x32xf32>
    %c0_12 = arith.constant 0 : index
    %c0_13 = arith.constant 0 : index
    %14 = vector.load %arg6[%c0_12, %c0_13] : memref<1x32xf32, #tpu.memory_space<vmem>>, vector<1x32xf32>
    %15 = vector.broadcast %14 : vector<1x32xf32> to vector<16x32xf32>
    %16 = arith.addf %13, %15 : vector<16x32xf32>
    %17 = vector.extract_strided_slice %10 {offsets = [0, 0], sizes = [16, 32], strides = [1, 1]} : vector<16x64xf32> to vector<16x32xf32>
    %cst_14 = arith.constant 0.353553385 : f32
    %18 = vector.broadcast %cst_14 : f32 to vector<16x32xf32>
    %19 = arith.mulf %17, %18 : vector<16x32xf32>
    %20 = vector.shape_cast %19 : vector<16x32xf32> to vector<2x8x32xf32>
    %21 = vector.extract_strided_slice %10 {offsets = [0, 32], sizes = [16, 32], strides = [1, 1]} : vector<16x64xf32> to vector<16x32xf32>
    %22 = vector.shape_cast %21 : vector<16x32xf32> to vector<2x8x32xf32>
    %23 = vector.shape_cast %16 : vector<16x32xf32> to vector<2x8x32xf32>
    %24 = tpu.iota {dimensions = array<i32: 0>} : vector<32x4xi32>
    %25 = tpu.iota {dimensions = array<i32: 1>} : vector<32x4xi32>
    %c8_i32 = arith.constant 8 : i32
    %26 = vector.broadcast %c8_i32 : i32 to vector<32x4xi32>
    %27 = arith.muli %25, %26 : vector<32x4xi32>
    %28 = arith.cmpi sge, %24, %27 : vector<32x4xi32>
    %c1_i32 = arith.constant 1 : i32
    %29 = vector.broadcast %c1_i32 : i32 to vector<32x4xi32>
    %30 = arith.addi %25, %29 : vector<32x4xi32>
    %c8_i32_15 = arith.constant 8 : i32
    %31 = vector.broadcast %c8_i32_15 : i32 to vector<32x4xi32>
    %32 = arith.muli %30, %31 : vector<32x4xi32>
    %33 = arith.cmpi slt, %24, %32 : vector<32x4xi32>
    %34 = arith.andi %28, %33 : vector<32x4xi1>
    %35 = arith.extui %34 : vector<32x4xi1> to vector<32x4xi32>
    %36 = arith.sitofp %35 : vector<32x4xi32> to vector<32x4xf32>
    %37 = arith.truncf %36 : vector<32x4xf32> to vector<32x4xbf16>
    %38 = tpu.iota {dimensions = array<i32: 1>} : vector<4x32xi32>
    %39 = tpu.iota {dimensions = array<i32: 0>} : vector<4x32xi32>
    %c8_i32_16 = arith.constant 8 : i32
    %40 = vector.broadcast %c8_i32_16 : i32 to vector<4x32xi32>
    %41 = arith.muli %39, %40 : vector<4x32xi32>
    %42 = arith.cmpi sge, %38, %41 : vector<4x32xi32>
    %c1_i32_17 = arith.constant 1 : i32
    %43 = vector.broadcast %c1_i32_17 : i32 to vector<4x32xi32>
    %44 = arith.addi %39, %43 : vector<4x32xi32>
    %c8_i32_18 = arith.constant 8 : i32
    %45 = vector.broadcast %c8_i32_18 : i32 to vector<4x32xi32>
    %46 = arith.muli %44, %45 : vector<4x32xi32>
    %47 = arith.cmpi slt, %38, %46 : vector<4x32xi32>
    %48 = arith.andi %42, %47 : vector<4x32xi1>
    %49 = arith.extui %48 : vector<4x32xi1> to vector<4x32xi32>
    %50 = arith.sitofp %49 : vector<4x32xi32> to vector<4x32xf32>
    %51 = arith.truncf %50 : vector<4x32xf32> to vector<4x32xbf16>
    %52 = vector.shape_cast %20 : vector<2x8x32xf32> to vector<2x1x8x32xf32>
    %53 = vector.shape_cast %22 : vector<2x8x32xf32> to vector<1x2x8x32xf32>
    %54 = vector.broadcast %52 : vector<2x1x8x32xf32> to vector<2x2x8x32xf32>
    %55 = vector.broadcast %53 : vector<1x2x8x32xf32> to vector<2x2x8x32xf32>
    %56 = arith.mulf %54, %55 : vector<2x2x8x32xf32>
    %57 = vector.shape_cast %56 : vector<2x2x8x32xf32> to vector<32x32xf32>
    %58 = arith.truncf %57 : vector<32x32xf32> to vector<32x32xbf16>
    %cst_19 = arith.constant dense<0.000000e+00> : vector<32x4xf32>
    %59 = tpu.matmul %58, %37, %cst_19 {dimension_numbers = #tpu.dot_dimension_numbers<[1], [0], [0], [1], [0, 0, 1, 1], [], []>} : vector<32x32xbf16>, vector<32x4xbf16>, vector<32x4xf32> -> vector<32x4xf32>
    %60 = vector.shape_cast %59 : vector<32x4xf32> to vector<2x2x8x4xf32>
    %cst_20 = arith.constant dense<0xFF800000> : vector<2x8x4xf32>
    %61 = vector.multi_reduction <maximumf>, %60, %cst_20 [1] : vector<2x2x8x4xf32> to vector<2x8x4xf32>
    %62 = vector.shape_cast %61 : vector<2x8x4xf32> to vector<2x1x8x4xf32>
    %63 = vector.broadcast %62 : vector<2x1x8x4xf32> to vector<2x2x8x4xf32>
    %64 = arith.subf %60, %63 : vector<2x2x8x4xf32>
    %65 = math.exp %64 : vector<2x2x8x4xf32>
    %cst_21 = arith.constant dense<0.000000e+00> : vector<2x8x4xf32>
    %66 = vector.multi_reduction <add>, %65, %cst_21 [1] : vector<2x2x8x4xf32> to vector<2x8x4xf32>
    %67 = vector.shape_cast %66 : vector<2x8x4xf32> to vector<2x1x8x4xf32>
    %68 = tpu.reciprocal %67 {approx = true} : vector<2x1x8x4xf32> -> vector<2x1x8x4xf32>
    %69 = vector.broadcast %68 : vector<2x1x8x4xf32> to vector<2x2x8x4xf32>
    %70 = arith.mulf %65, %69 : vector<2x2x8x4xf32>
    %71 = vector.shape_cast %70 : vector<2x2x8x4xf32> to vector<32x4xf32>
    %72 = arith.truncf %71 : vector<32x4xf32> to vector<32x4xbf16>
    %cst_22 = arith.constant dense<0.000000e+00> : vector<32x32xf32>
    %73 = tpu.matmul %72, %51, %cst_22 {dimension_numbers = #tpu.dot_dimension_numbers<[1], [0], [0], [1], [0, 0, 1, 1], [], []>} : vector<32x4xbf16>, vector<4x32xbf16>, vector<32x32xf32> -> vector<32x32xf32>
    %74 = vector.shape_cast %73 : vector<32x32xf32> to vector<2x2x8x32xf32>
    %75 = vector.shape_cast %23 : vector<2x8x32xf32> to vector<1x2x8x32xf32>
    %76 = vector.broadcast %75 : vector<1x2x8x32xf32> to vector<2x2x8x32xf32>
    %77 = arith.mulf %74, %76 : vector<2x2x8x32xf32>
    %cst_23 = arith.constant dense<0.000000e+00> : vector<2x8x32xf32>
    %78 = vector.multi_reduction <add>, %77, %cst_23 [1] : vector<2x2x8x32xf32> to vector<2x8x32xf32>
    %79 = vector.shape_cast %78 : vector<2x8x32xf32> to vector<16x32xf32>
    %80 = arith.truncf %79 : vector<16x32xf32> to vector<16x32xbf16>
    %c0_24 = arith.constant 0 : index
    %c0_25 = arith.constant 0 : index
    %81 = vector.load %arg7[%c0_24, %c0_25] : memref<32x32xbf16, #tpu.memory_space<vmem>>, vector<32x32xbf16>
    %cst_26 = arith.constant dense<0.000000e+00> : vector<16x32xf32>
    %82 = tpu.matmul %80, %81, %cst_26 {dimension_numbers = #tpu.dot_dimension_numbers<[1], [0], [0], [1], [0, 0, 1, 1], [], []>} : vector<16x32xbf16>, vector<32x32xbf16>, vector<16x32xf32> -> vector<16x32xf32>
    %c0_27 = arith.constant 0 : index
    %c0_28 = arith.constant 0 : index
    %83 = vector.load %arg8[%c0_27, %c0_28] : memref<1x32xf32, #tpu.memory_space<vmem>>, vector<1x32xf32>
    %84 = vector.broadcast %83 : vector<1x32xf32> to vector<16x32xf32>
    %85 = arith.addf %82, %84 : vector<16x32xf32>
    %86 = arith.addf %2, %85 : vector<16x32xf32>
    %cst_29 = arith.constant dense<0.000000e+00> : vector<16xf32>
    %87 = vector.multi_reduction <add>, %86, %cst_29 [1] : vector<16x32xf32> to vector<16xf32>
    %88 = vector.shape_cast %87 : vector<16xf32> to vector<16x1xf32>
    %cst_30 = arith.constant 3.200000e+01 : f32
    %89 = vector.broadcast %cst_30 : f32 to vector<16x1xf32>
    %90 = arith.divf %88, %89 : vector<16x1xf32>
    %91 = vector.broadcast %90 : vector<16x1xf32> to vector<16x32xf32>
    %92 = arith.subf %86, %91 : vector<16x32xf32>
    %93 = arith.mulf %92, %92 : vector<16x32xf32>
    %cst_31 = arith.constant dense<0.000000e+00> : vector<16xf32>
    %94 = vector.multi_reduction <add>, %93, %cst_31 [1] : vector<16x32xf32> to vector<16xf32>
    %95 = vector.shape_cast %94 : vector<16xf32> to vector<16x1xf32>
    %cst_32 = arith.constant 3.200000e+01 : f32
    %96 = vector.broadcast %cst_32 : f32 to vector<16x1xf32>
    %97 = arith.divf %95, %96 : vector<16x1xf32>
    %cst_33 = arith.constant 9.99999974E-6 : f32
    %98 = vector.broadcast %cst_33 : f32 to vector<16x1xf32>
    %99 = arith.addf %97, %98 : vector<16x1xf32>
    %100 = math.rsqrt %99 : vector<16x1xf32>
    %101 = vector.broadcast %100 : vector<16x1xf32> to vector<16x32xf32>
    %102 = arith.mulf %92, %101 : vector<16x32xf32>
    %c0_34 = arith.constant 0 : index
    %c0_35 = arith.constant 0 : index
    %103 = vector.load %arg9[%c0_34, %c0_35] : memref<1x32xf32, #tpu.memory_space<vmem>>, vector<1x32xf32>
    %104 = vector.broadcast %103 : vector<1x32xf32> to vector<16x32xf32>
    %105 = arith.mulf %102, %104 : vector<16x32xf32>
    %c0_36 = arith.constant 0 : index
    %c0_37 = arith.constant 0 : index
    %106 = vector.load %arg10[%c0_36, %c0_37] : memref<1x32xf32, #tpu.memory_space<vmem>>, vector<1x32xf32>
    %107 = vector.broadcast %106 : vector<1x32xf32> to vector<16x32xf32>
    %108 = arith.addf %105, %107 : vector<16x32xf32>
    %109 = vector.shape_cast %108 : vector<16x32xf32> to vector<2x8x32xf32>
    %110 = arith.truncf %109 : vector<2x8x32xf32> to vector<2x8x32xbf16>
    %c0_38 = arith.constant 0 : index
    %c0_39 = arith.constant 0 : index
    %c0_40 = arith.constant 0 : index
    %111 = vector.load %arg13[%c0_38, %c0_39, %c0_40] : memref<2x8x32xbf16, #tpu.memory_space<vmem>>, vector<2x8x32xbf16>
    tpu.vector_store %arg13[%c0_38, %c0_39, %c0_40], %110 {strides = array<i32>} : memref<2x8x32xbf16, #tpu.memory_space<vmem>>, vector<2x8x32xbf16>,
    %112 = arith.addf %108, %3 : vector<16x32xf32>
    %113 = arith.truncf %112 : vector<16x32xf32> to vector<16x32xbf16>
    %c0_41 = arith.constant 0 : index
    %c0_42 = arith.constant 0 : index
    %114 = vector.load %arg11[%c0_41, %c0_42] : memref<32x128xbf16, #tpu.memory_space<vmem>>, vector<32x128xbf16>
    %cst_43 = arith.constant dense<0.000000e+00> : vector<16x128xf32>
    %115 = tpu.matmul %113, %114, %cst_43 {dimension_numbers = #tpu.dot_dimension_numbers<[1], [0], [0], [1], [0, 0, 1, 1], [], []>} : vector<16x32xbf16>, vector<32x128xbf16>, vector<16x128xf32> -> vector<16x128xf32>
    %c0_44 = arith.constant 0 : index
    %c0_45 = arith.constant 0 : index
    %116 = vector.load %arg12[%c0_44, %c0_45] : memref<1x128xf32, #tpu.memory_space<vmem>>, vector<1x128xf32>
    %117 = vector.broadcast %116 : vector<1x128xf32> to vector<16x128xf32>
    %118 = arith.addf %115, %117 : vector<16x128xf32>
    %119 = vector.extract_strided_slice %118 {offsets = [0, 64], sizes = [16, 32], strides = [1, 1]} : vector<16x128xf32> to vector<16x32xf32>
    %120 = vector.shape_cast %119 : vector<16x32xf32> to vector<16x4x8xf32>
    %cst_46 = arith.constant dense<0xFF800000> : vector<16x4xf32>
    %121 = vector.multi_reduction <maximumf>, %120, %cst_46 [2] : vector<16x4x8xf32> to vector<16x4xf32>
    %122 = vector.shape_cast %121 : vector<16x4xf32> to vector<16x4x1xf32>
    %123 = vector.broadcast %122 : vector<16x4x1xf32> to vector<16x4x8xf32>
    %124 = arith.subf %120, %123 : vector<16x4x8xf32>
    %125 = math.exp %124 : vector<16x4x8xf32>
    %cst_47 = arith.constant dense<0.000000e+00> : vector<16x4xf32>
    %126 = vector.multi_reduction <add>, %125, %cst_47 [2] : vector<16x4x8xf32> to vector<16x4xf32>
    %127 = vector.shape_cast %126 : vector<16x4xf32> to vector<16x4x1xf32>
    %128 = tpu.reciprocal %127 {approx = true} : vector<16x4x1xf32> -> vector<16x4x1xf32>
    %129 = vector.broadcast %128 : vector<16x4x1xf32> to vector<16x4x8xf32>
    %130 = arith.mulf %125, %129 : vector<16x4x8xf32>
    %131 = vector.extract_strided_slice %118 {offsets = [0, 0], sizes = [16, 64], strides = [1, 1]} : vector<16x128xf32> to vector<16x64xf32>
    %132 = vector.shape_cast %130 : vector<16x4x8xf32> to vector<16x32xf32>
    %133 = vector.extract_strided_slice %118 {offsets = [0, 96], sizes = [16, 32], strides = [1, 1]} : vector<16x128xf32> to vector<16x32xf32>
    %134 = tpu.concatenate %131, %132, %133 in 1 : vector<16x64xf32>, vector<16x32xf32>, vector<16x32xf32> -> vector<16x128xf32>
    %135 = vector.shape_cast %134 : vector<16x128xf32> to vector<2x8x128xf32>
    %c0_48 = arith.constant 0 : index
    %c0_49 = arith.constant 0 : index
    %c0_50 = arith.constant 0 : index
    %136 = vector.load %arg14[%c0_48, %c0_49, %c0_50] : memref<2x8x128xf32, #tpu.memory_space<vmem>>, vector<2x8x128xf32>
    tpu.vector_store %arg14[%c0_48, %c0_49, %c0_50], %135 {strides = array<i32>} : memref<2x8x128xf32, #tpu.memory_space<vmem>>, vector<2x8x128xf32>,
    return
  }
  func.func @transform_0(%arg0: i32) -> (i32, i32, i32) {
    %c0_i32 = arith.constant 0 : i32
    %c0_i32_0 = arith.constant 0 : i32
    %c0_i32_1 = arith.constant 0 : i32
    return %c0_i32, %arg0, %c0_i32_0 : i32, i32, i32
  }
  func.func @transform_1(%arg0: i32) -> (i32, i32, i32) {
    %c0_i32 = arith.constant 0 : i32
    %c0_i32_0 = arith.constant 0 : i32
    %c0_i32_1 = arith.constant 0 : i32
    return %c0_i32, %arg0, %c0_i32_0 : i32, i32, i32
  }
  func.func @transform_2(%arg0: i32) -> (i32, i32) {
    %c0_i32 = arith.constant 0 : i32
    %c0_i32_0 = arith.constant 0 : i32
    %c0_i32_1 = arith.constant 0 : i32
    return %c0_i32, %c0_i32_0 : i32, i32
  }
  func.func @transform_3(%arg0: i32) -> (i32, i32) {
    %c0_i32 = arith.constant 0 : i32
    %c0_i32_0 = arith.constant 0 : i32
    %c0_i32_1 = arith.constant 0 : i32
    return %c0_i32, %c0_i32_0 : i32, i32
  }
  func.func @transform_4(%arg0: i32) -> (i32, i32) {
    %c0_i32 = arith.constant 0 : i32
    %c0_i32_0 = arith.constant 0 : i32
    %c0_i32_1 = arith.constant 0 : i32
    return %c0_i32, %c0_i32_0 : i32, i32
  }
  func.func @transform_5(%arg0: i32) -> (i32, i32) {
    %c0_i32 = arith.constant 0 : i32
    %c0_i32_0 = arith.constant 0 : i32
    %c0_i32_1 = arith.constant 0 : i32
    return %c0_i32, %c0_i32_0 : i32, i32
  }
  func.func @transform_6(%arg0: i32) -> (i32, i32) {
    %c0_i32 = arith.constant 0 : i32
    %c0_i32_0 = arith.constant 0 : i32
    %c0_i32_1 = arith.constant 0 : i32
    return %c0_i32, %c0_i32_0 : i32, i32
  }
  func.func @transform_7(%arg0: i32) -> (i32, i32) {
    %c0_i32 = arith.constant 0 : i32
    %c0_i32_0 = arith.constant 0 : i32
    %c0_i32_1 = arith.constant 0 : i32
    return %c0_i32, %c0_i32_0 : i32, i32
  }
  func.func @transform_8(%arg0: i32) -> (i32, i32) {
    %c0_i32 = arith.constant 0 : i32
    %c0_i32_0 = arith.constant 0 : i32
    %c0_i32_1 = arith.constant 0 : i32
    return %c0_i32, %c0_i32_0 : i32, i32
  }
  func.func @transform_9(%arg0: i32) -> (i32, i32) {
    %c0_i32 = arith.constant 0 : i32
    %c0_i32_0 = arith.constant 0 : i32
    %c0_i32_1 = arith.constant 0 : i32
    return %c0_i32, %c0_i32_0 : i32, i32
  }
  func.func @transform_10(%arg0: i32) -> (i32, i32) {
    %c0_i32 = arith.constant 0 : i32
    %c0_i32_0 = arith.constant 0 : i32
    %c0_i32_1 = arith.constant 0 : i32
    return %c0_i32, %c0_i32_0 : i32, i32
  }
  func.func @transform_11(%arg0: i32) -> (i32, i32) {
    %c0_i32 = arith.constant 0 : i32
    %c0_i32_0 = arith.constant 0 : i32
    %c0_i32_1 = arith.constant 0 : i32
    return %c0_i32, %c0_i32_0 : i32, i32
  }
  func.func @transform_12(%arg0: i32) -> (i32, i32, i32) {
    %c0_i32 = arith.constant 0 : i32
    %c0_i32_0 = arith.constant 0 : i32
    %c0_i32_1 = arith.constant 0 : i32
    return %c0_i32, %arg0, %c0_i32_0 : i32, i32, i32
  }
  func.func @transform_13(%arg0: i32) -> (i32, i32, i32) {
    %c0_i32 = arith.constant 0 : i32
    %c0_i32_0 = arith.constant 0 : i32
    %c0_i32_1 = arith.constant 0 : i32
    return %c0_i32, %arg0, %c0_i32_0 : i32, i32, i32
  }
}

module attributes {stable_mosaic.version = 11 : i64} {
  func.func @_value_proj_kernel(%arg0: i32, %arg1: i32, %arg2: memref<1x32x256xf32, #tpu.memory_space<vmem>>, %arg3: memref<32x32xbf16, #tpu.memory_space<vmem>>, %arg4: memref<1x32xf32, #tpu.memory_space<vmem>>, %arg5: memref<1x256x32xbf16, #tpu.memory_space<vmem>>) attributes {dimension_semantics = [#tpu.dimension_semantics<parallel>, #tpu.dimension_semantics<parallel>], iteration_bounds = array<i64: 2, 1>, scalar_prefetch = 0 : i64, scratch_operands = 0 : i64, tpu.core_type = #tpu.core_type<tc>, window_params = [{transform_indices = @transform_0, window_bounds = array<i64: 1, 32, 256>}, {pipeline_mode = #tpu.pipeline_mode<synchronous>, transform_indices = @transform_1, window_bounds = array<i64: 32, 32>}, {pipeline_mode = #tpu.pipeline_mode<synchronous>, transform_indices = @transform_2, window_bounds = array<i64: 1, 32>}, {transform_indices = @transform_3, window_bounds = array<i64: 1, 256, 32>}]} {
    %c0 = arith.constant 0 : index
    %c0_0 = arith.constant 0 : index
    %c0_1 = arith.constant 0 : index
    %0 = vector.load %arg2[%c0, %c0_0, %c0_1] : memref<1x32x256xf32, #tpu.memory_space<vmem>>, vector<1x32x256xf32>
    %1 = vector.shape_cast %0 : vector<1x32x256xf32> to vector<32x256xf32>
    %2 = tpu.transpose %1, [1, 0] : vector<32x256xf32> -> vector<256x32xf32>
    %3 = arith.truncf %2 : vector<256x32xf32> to vector<256x32xbf16>
    %c0_2 = arith.constant 0 : index
    %c0_3 = arith.constant 0 : index
    %4 = vector.load %arg3[%c0_2, %c0_3] : memref<32x32xbf16, #tpu.memory_space<vmem>>, vector<32x32xbf16>
    %cst = arith.constant dense<0.000000e+00> : vector<256x32xf32>
    %5 = tpu.matmul %3, %4, %cst {dimension_numbers = #tpu.dot_dimension_numbers<[1], [0], [0], [1], [0, 0, 1, 1], [], []>} : vector<256x32xbf16>, vector<32x32xbf16>, vector<256x32xf32> -> vector<256x32xf32>
    %c0_4 = arith.constant 0 : index
    %c0_5 = arith.constant 0 : index
    %6 = vector.load %arg4[%c0_4, %c0_5] : memref<1x32xf32, #tpu.memory_space<vmem>>, vector<1x32xf32>
    %7 = vector.broadcast %6 : vector<1x32xf32> to vector<256x32xf32>
    %8 = arith.addf %5, %7 : vector<256x32xf32>
    %9 = arith.truncf %8 : vector<256x32xf32> to vector<256x32xbf16>
    %c0_6 = arith.constant 0 : index
    %c0_7 = arith.constant 0 : index
    %c0_8 = arith.constant 0 : index
    %10 = vector.load %arg5[%c0_6, %c0_7, %c0_8] : memref<1x256x32xbf16, #tpu.memory_space<vmem>>, vector<1x256x32xbf16>
    %11 = vector.shape_cast %10 : vector<1x256x32xbf16> to vector<256x32xbf16>
    %12 = vector.shape_cast %9 : vector<256x32xbf16> to vector<1x256x32xbf16>
    tpu.vector_store %arg5[%c0_6, %c0_7, %c0_8], %12 {strides = array<i32>} : memref<1x256x32xbf16, #tpu.memory_space<vmem>>, vector<1x256x32xbf16>,
    return
  }
  func.func @transform_0(%arg0: i32, %arg1: i32) -> (i32, i32, i32) {
    %c0_i32 = arith.constant 0 : i32
    %c0_i32_0 = arith.constant 0 : i32
    return %arg0, %c0_i32, %arg1 : i32, i32, i32
  }
  func.func @transform_1(%arg0: i32, %arg1: i32) -> (i32, i32) {
    %c0_i32 = arith.constant 0 : i32
    %c0_i32_0 = arith.constant 0 : i32
    %c0_i32_1 = arith.constant 0 : i32
    return %c0_i32, %c0_i32_0 : i32, i32
  }
  func.func @transform_2(%arg0: i32, %arg1: i32) -> (i32, i32) {
    %c0_i32 = arith.constant 0 : i32
    %c0_i32_0 = arith.constant 0 : i32
    %c0_i32_1 = arith.constant 0 : i32
    return %c0_i32, %c0_i32_0 : i32, i32
  }
  func.func @transform_3(%arg0: i32, %arg1: i32) -> (i32, i32, i32) {
    %c0_i32 = arith.constant 0 : i32
    %c0_i32_0 = arith.constant 0 : i32
    return %arg0, %arg1, %c0_i32 : i32, i32, i32
  }
}

module attributes {stable_mosaic.version = 11 : i64} {
  func.func @_cross_ffn_kernel(%arg0: i32, %arg1: memref<16x32xf32, #tpu.memory_space<vmem>>, %arg2: memref<16x32xbf16, #tpu.memory_space<vmem>>, %arg3: memref<32x32xbf16, #tpu.memory_space<vmem>>, %arg4: memref<1x32xf32, #tpu.memory_space<vmem>>, %arg5: memref<1x32xf32, #tpu.memory_space<vmem>>, %arg6: memref<1x32xf32, #tpu.memory_space<vmem>>, %arg7: memref<32x64xbf16, #tpu.memory_space<vmem>>, %arg8: memref<1x64xf32, #tpu.memory_space<vmem>>, %arg9: memref<64x32xbf16, #tpu.memory_space<vmem>>, %arg10: memref<1x32xf32, #tpu.memory_space<vmem>>, %arg11: memref<1x32xf32, #tpu.memory_space<vmem>>, %arg12: memref<1x32xf32, #tpu.memory_space<vmem>>, %arg13: memref<16x32xf32, #tpu.memory_space<vmem>>) attributes {dimension_semantics = [#tpu.dimension_semantics<parallel>], iteration_bounds = array<i64: 1>, scalar_prefetch = 0 : i64, scratch_operands = 0 : i64, tpu.core_type = #tpu.core_type<tc>, window_params = [{transform_indices = @transform_0, window_bounds = array<i64: 16, 32>}, {transform_indices = @transform_1, window_bounds = array<i64: 16, 32>}, {pipeline_mode = #tpu.pipeline_mode<synchronous>, transform_indices = @transform_2, window_bounds = array<i64: 32, 32>}, {pipeline_mode = #tpu.pipeline_mode<synchronous>, transform_indices = @transform_3, window_bounds = array<i64: 1, 32>}, {pipeline_mode = #tpu.pipeline_mode<synchronous>, transform_indices = @transform_4, window_bounds = array<i64: 1, 32>}, {pipeline_mode = #tpu.pipeline_mode<synchronous>, transform_indices = @transform_5, window_bounds = array<i64: 1, 32>}, {pipeline_mode = #tpu.pipeline_mode<synchronous>, transform_indices = @transform_6, window_bounds = array<i64: 32, 64>}, {pipeline_mode = #tpu.pipeline_mode<synchronous>, transform_indices = @transform_7, window_bounds = array<i64: 1, 64>}, {pipeline_mode = #tpu.pipeline_mode<synchronous>, transform_indices = @transform_8, window_bounds = array<i64: 64, 32>}, {pipeline_mode = #tpu.pipeline_mode<synchronous>, transform_indices = @transform_9, window_bounds = array<i64: 1, 32>}, {pipeline_mode = #tpu.pipeline_mode<synchronous>, transform_indices = @transform_10, window_bounds = array<i64: 1, 32>}, {pipeline_mode = #tpu.pipeline_mode<synchronous>, transform_indices = @transform_11, window_bounds = array<i64: 1, 32>}, {transform_indices = @transform_12, window_bounds = array<i64: 16, 32>}]} {
    %c0 = arith.constant 0 : index
    %c0_0 = arith.constant 0 : index
    %0 = vector.load %arg1[%c0, %c0_0] : memref<16x32xf32, #tpu.memory_space<vmem>>, vector<16x32xf32>
    %1 = arith.truncf %0 : vector<16x32xf32> to vector<16x32xbf16>
    %c0_1 = arith.constant 0 : index
    %c0_2 = arith.constant 0 : index
    %2 = vector.load %arg3[%c0_1, %c0_2] : memref<32x32xbf16, #tpu.memory_space<vmem>>, vector<32x32xbf16>
    %cst = arith.constant dense<0.000000e+00> : vector<16x32xf32>
    %3 = tpu.matmul %1, %2, %cst {dimension_numbers = #tpu.dot_dimension_numbers<[1], [0], [0], [1], [0, 0, 1, 1], [], []>} : vector<16x32xbf16>, vector<32x32xbf16>, vector<16x32xf32> -> vector<16x32xf32>
    %c0_3 = arith.constant 0 : index
    %c0_4 = arith.constant 0 : index
    %4 = vector.load %arg4[%c0_3, %c0_4] : memref<1x32xf32, #tpu.memory_space<vmem>>, vector<1x32xf32>
    %5 = vector.broadcast %4 : vector<1x32xf32> to vector<16x32xf32>
    %6 = arith.addf %3, %5 : vector<16x32xf32>
    %c0_5 = arith.constant 0 : index
    %c0_6 = arith.constant 0 : index
    %7 = vector.load %arg2[%c0_5, %c0_6] : memref<16x32xbf16, #tpu.memory_space<vmem>>, vector<16x32xbf16>
    %8 = arith.extf %7 : vector<16x32xbf16> to vector<16x32xf32>
    %9 = arith.addf %8, %6 : vector<16x32xf32>
    %cst_7 = arith.constant dense<0.000000e+00> : vector<16xf32>
    %10 = vector.multi_reduction <add>, %9, %cst_7 [1] : vector<16x32xf32> to vector<16xf32>
    %11 = vector.shape_cast %10 : vector<16xf32> to vector<16x1xf32>
    %cst_8 = arith.constant 3.200000e+01 : f32
    %12 = vector.broadcast %cst_8 : f32 to vector<16x1xf32>
    %13 = arith.divf %11, %12 : vector<16x1xf32>
    %14 = vector.broadcast %13 : vector<16x1xf32> to vector<16x32xf32>
    %15 = arith.subf %9, %14 : vector<16x32xf32>
    %16 = arith.mulf %15, %15 : vector<16x32xf32>
    %cst_9 = arith.constant dense<0.000000e+00> : vector<16xf32>
    %17 = vector.multi_reduction <add>, %16, %cst_9 [1] : vector<16x32xf32> to vector<16xf32>
    %18 = vector.shape_cast %17 : vector<16xf32> to vector<16x1xf32>
    %cst_10 = arith.constant 3.200000e+01 : f32
    %19 = vector.broadcast %cst_10 : f32 to vector<16x1xf32>
    %20 = arith.divf %18, %19 : vector<16x1xf32>
    %cst_11 = arith.constant 9.99999974E-6 : f32
    %21 = vector.broadcast %cst_11 : f32 to vector<16x1xf32>
    %22 = arith.addf %20, %21 : vector<16x1xf32>
    %23 = math.rsqrt %22 : vector<16x1xf32>
    %24 = vector.broadcast %23 : vector<16x1xf32> to vector<16x32xf32>
    %25 = arith.mulf %15, %24 : vector<16x32xf32>
    %c0_12 = arith.constant 0 : index
    %c0_13 = arith.constant 0 : index
    %26 = vector.load %arg5[%c0_12, %c0_13] : memref<1x32xf32, #tpu.memory_space<vmem>>, vector<1x32xf32>
    %27 = vector.broadcast %26 : vector<1x32xf32> to vector<16x32xf32>
    %28 = arith.mulf %25, %27 : vector<16x32xf32>
    %c0_14 = arith.constant 0 : index
    %c0_15 = arith.constant 0 : index
    %29 = vector.load %arg6[%c0_14, %c0_15] : memref<1x32xf32, #tpu.memory_space<vmem>>, vector<1x32xf32>
    %30 = vector.broadcast %29 : vector<1x32xf32> to vector<16x32xf32>
    %31 = arith.addf %28, %30 : vector<16x32xf32>
    %32 = arith.truncf %31 : vector<16x32xf32> to vector<16x32xbf16>
    %c0_16 = arith.constant 0 : index
    %c0_17 = arith.constant 0 : index
    %33 = vector.load %arg7[%c0_16, %c0_17] : memref<32x64xbf16, #tpu.memory_space<vmem>>, vector<32x64xbf16>
    %cst_18 = arith.constant dense<0.000000e+00> : vector<16x64xf32>
    %34 = tpu.matmul %32, %33, %cst_18 {dimension_numbers = #tpu.dot_dimension_numbers<[1], [0], [0], [1], [0, 0, 1, 1], [], []>} : vector<16x32xbf16>, vector<32x64xbf16>, vector<16x64xf32> -> vector<16x64xf32>
    %c0_19 = arith.constant 0 : index
    %c0_20 = arith.constant 0 : index
    %35 = vector.load %arg8[%c0_19, %c0_20] : memref<1x64xf32, #tpu.memory_space<vmem>>, vector<1x64xf32>
    %36 = vector.broadcast %35 : vector<1x64xf32> to vector<16x64xf32>
    %37 = arith.addf %34, %36 : vector<16x64xf32>
    %cst_21 = arith.constant 0.000000e+00 : f32
    %38 = vector.broadcast %cst_21 : f32 to vector<16x64xf32>
    %39 = arith.maximumf %37, %38 : vector<16x64xf32>
    %40 = arith.truncf %39 : vector<16x64xf32> to vector<16x64xbf16>
    %c0_22 = arith.constant 0 : index
    %c0_23 = arith.constant 0 : index
    %41 = vector.load %arg9[%c0_22, %c0_23] : memref<64x32xbf16, #tpu.memory_space<vmem>>, vector<64x32xbf16>
    %cst_24 = arith.constant dense<0.000000e+00> : vector<16x32xf32>
    %42 = tpu.matmul %40, %41, %cst_24 {dimension_numbers = #tpu.dot_dimension_numbers<[1], [0], [0], [1], [0, 0, 1, 1], [], []>} : vector<16x64xbf16>, vector<64x32xbf16>, vector<16x32xf32> -> vector<16x32xf32>
    %c0_25 = arith.constant 0 : index
    %c0_26 = arith.constant 0 : index
    %43 = vector.load %arg10[%c0_25, %c0_26] : memref<1x32xf32, #tpu.memory_space<vmem>>, vector<1x32xf32>
    %44 = vector.broadcast %43 : vector<1x32xf32> to vector<16x32xf32>
    %45 = arith.addf %42, %44 : vector<16x32xf32>
    %46 = arith.addf %31, %45 : vector<16x32xf32>
    %cst_27 = arith.constant dense<0.000000e+00> : vector<16xf32>
    %47 = vector.multi_reduction <add>, %46, %cst_27 [1] : vector<16x32xf32> to vector<16xf32>
    %48 = vector.shape_cast %47 : vector<16xf32> to vector<16x1xf32>
    %cst_28 = arith.constant 3.200000e+01 : f32
    %49 = vector.broadcast %cst_28 : f32 to vector<16x1xf32>
    %50 = arith.divf %48, %49 : vector<16x1xf32>
    %51 = vector.broadcast %50 : vector<16x1xf32> to vector<16x32xf32>
    %52 = arith.subf %46, %51 : vector<16x32xf32>
    %53 = arith.mulf %52, %52 : vector<16x32xf32>
    %cst_29 = arith.constant dense<0.000000e+00> : vector<16xf32>
    %54 = vector.multi_reduction <add>, %53, %cst_29 [1] : vector<16x32xf32> to vector<16xf32>
    %55 = vector.shape_cast %54 : vector<16xf32> to vector<16x1xf32>
    %cst_30 = arith.constant 3.200000e+01 : f32
    %56 = vector.broadcast %cst_30 : f32 to vector<16x1xf32>
    %57 = arith.divf %55, %56 : vector<16x1xf32>
    %cst_31 = arith.constant 9.99999974E-6 : f32
    %58 = vector.broadcast %cst_31 : f32 to vector<16x1xf32>
    %59 = arith.addf %57, %58 : vector<16x1xf32>
    %60 = math.rsqrt %59 : vector<16x1xf32>
    %61 = vector.broadcast %60 : vector<16x1xf32> to vector<16x32xf32>
    %62 = arith.mulf %52, %61 : vector<16x32xf32>
    %c0_32 = arith.constant 0 : index
    %c0_33 = arith.constant 0 : index
    %63 = vector.load %arg11[%c0_32, %c0_33] : memref<1x32xf32, #tpu.memory_space<vmem>>, vector<1x32xf32>
    %64 = vector.broadcast %63 : vector<1x32xf32> to vector<16x32xf32>
    %65 = arith.mulf %62, %64 : vector<16x32xf32>
    %c0_34 = arith.constant 0 : index
    %c0_35 = arith.constant 0 : index
    %66 = vector.load %arg12[%c0_34, %c0_35] : memref<1x32xf32, #tpu.memory_space<vmem>>, vector<1x32xf32>
    %67 = vector.broadcast %66 : vector<1x32xf32> to vector<16x32xf32>
    %68 = arith.addf %65, %67 : vector<16x32xf32>
    %c0_36 = arith.constant 0 : index
    %c0_37 = arith.constant 0 : index
    %69 = vector.load %arg13[%c0_36, %c0_37] : memref<16x32xf32, #tpu.memory_space<vmem>>, vector<16x32xf32>
    tpu.vector_store %arg13[%c0_36, %c0_37], %68 {strides = array<i32>} : memref<16x32xf32, #tpu.memory_space<vmem>>, vector<16x32xf32>,
    return
  }
  func.func @transform_0(%arg0: i32) -> (i32, i32) {
    %c0_i32 = arith.constant 0 : i32
    %c0_i32_0 = arith.constant 0 : i32
    return %arg0, %c0_i32 : i32, i32
  }
  func.func @transform_1(%arg0: i32) -> (i32, i32) {
    %c0_i32 = arith.constant 0 : i32
    %c0_i32_0 = arith.constant 0 : i32
    return %arg0, %c0_i32 : i32, i32
  }
  func.func @transform_2(%arg0: i32) -> (i32, i32) {
    %c0_i32 = arith.constant 0 : i32
    %c0_i32_0 = arith.constant 0 : i32
    %c0_i32_1 = arith.constant 0 : i32
    return %c0_i32, %c0_i32_0 : i32, i32
  }
  func.func @transform_3(%arg0: i32) -> (i32, i32) {
    %c0_i32 = arith.constant 0 : i32
    %c0_i32_0 = arith.constant 0 : i32
    %c0_i32_1 = arith.constant 0 : i32
    return %c0_i32, %c0_i32_0 : i32, i32
  }
  func.func @transform_4(%arg0: i32) -> (i32, i32) {
    %c0_i32 = arith.constant 0 : i32
    %c0_i32_0 = arith.constant 0 : i32
    %c0_i32_1 = arith.constant 0 : i32
    return %c0_i32, %c0_i32_0 : i32, i32
  }
  func.func @transform_5(%arg0: i32) -> (i32, i32) {
    %c0_i32 = arith.constant 0 : i32
    %c0_i32_0 = arith.constant 0 : i32
    %c0_i32_1 = arith.constant 0 : i32
    return %c0_i32, %c0_i32_0 : i32, i32
  }
  func.func @transform_6(%arg0: i32) -> (i32, i32) {
    %c0_i32 = arith.constant 0 : i32
    %c0_i32_0 = arith.constant 0 : i32
    %c0_i32_1 = arith.constant 0 : i32
    return %c0_i32, %c0_i32_0 : i32, i32
  }
  func.func @transform_7(%arg0: i32) -> (i32, i32) {
    %c0_i32 = arith.constant 0 : i32
    %c0_i32_0 = arith.constant 0 : i32
    %c0_i32_1 = arith.constant 0 : i32
    return %c0_i32, %c0_i32_0 : i32, i32
  }
  func.func @transform_8(%arg0: i32) -> (i32, i32) {
    %c0_i32 = arith.constant 0 : i32
    %c0_i32_0 = arith.constant 0 : i32
    %c0_i32_1 = arith.constant 0 : i32
    return %c0_i32, %c0_i32_0 : i32, i32
  }
  func.func @transform_9(%arg0: i32) -> (i32, i32) {
    %c0_i32 = arith.constant 0 : i32
    %c0_i32_0 = arith.constant 0 : i32
    %c0_i32_1 = arith.constant 0 : i32
    return %c0_i32, %c0_i32_0 : i32, i32
  }
  func.func @transform_10(%arg0: i32) -> (i32, i32) {
    %c0_i32 = arith.constant 0 : i32
    %c0_i32_0 = arith.constant 0 : i32
    %c0_i32_1 = arith.constant 0 : i32
    return %c0_i32, %c0_i32_0 : i32, i32
  }
  func.func @transform_11(%arg0: i32) -> (i32, i32) {
    %c0_i32 = arith.constant 0 : i32
    %c0_i32_0 = arith.constant 0 : i32
    %c0_i32_1 = arith.constant 0 : i32
    return %c0_i32, %c0_i32_0 : i32, i32
  }
  func.func @transform_12(%arg0: i32) -> (i32, i32) {
    %c0_i32 = arith.constant 0 : i32
    %c0_i32_0 = arith.constant 0 : i32
    return %arg0, %c0_i32 : i32, i32
  }
}

</mosaic_0001>

<bundles_post_ra>
// kernel: mul.26
= control target key start
LH: loop header
LB: loop body
LE: loop exit
PB: predicated region body
PF: predicated region fallthrough
CT: control target
= control target key end

     0   :  { %vm3_vm0 = vcmask 64512   ;;  %s196_s10 = smov 120   ;;  %s197_s11 = smov 104   ;;  %s278_s0 = inlined_call_operand.vmem [shape: f32[2,8,32], index: 0, kind: input, shape index: {}]   ;;  %s279_s1 = inlined_call_operand.vmem [shape: f32[2,8,4,8], index: 1, kind: output, shape index: {}]  }
   0x1   :  { %v30_v0 = vld [vmem:[%s278_s0] sm:$0xff]   ;;  %v175_v1 = vld [vmem:[%s278_s0 + $0x8] sm:$0xff]   ;;  %s195_s0 = smov 112  }
   0x2   :  { %31 = vrot.lane.b32.xlu1 %v30_v0, %s195_s0  ;;  %14 = vrot.lane.b32.xlu0 %v30_v0, %s196_s10  ;;  %10 = vst.msk [vmem:[#allocation0 + $0x40] ss:$8 sm:$0xf] %vm3_vm0, %v175_v1   ;;  %12 = vst.msk [vmem:[#allocation0 + $0x40] ss:$8 sm:$0xf0] %vm3_vm0, %v175_v1  }
   0x3   :  { %4 = vst.msk [vmem:[#allocation0] ss:$8 sm:$0xf] %vm3_vm0, %v30_v0   ;;  %5 = vst.msk [vmem:[#allocation0] ss:$8 sm:$0xf0] %vm3_vm0, %v30_v0  }
   0x6   :  { %40 = vrot.lane.b32.xlu1 %v175_v1, %s195_s0  ;;  %23 = vrot.lane.b32.xlu0 %v175_v1, %s196_s10 }
   0xa   :  { %57 = vrot.lane.b32.xlu1 %v175_v1, %s197_s11  ;;  %48 = vrot.lane.b32.xlu0 %v30_v0, %s197_s11 }
  0x74   :  { %v32_v2 = vpop.permute.xlu1 %31   ;;  %v15_v3 = vpop.permute.xlu0 %14  }
  0x75   :  { %35 = vst.msk [vmem:[#allocation0 + $0x2] ss:$8 sm:$0xf] %vm3_vm0, %v32_v2   ;;  %37 = vst.msk [vmem:[#allocation0 + $0x2] ss:$8 sm:$0xf0] %vm3_vm0, %v32_v2  }
  0x76   :  { %18 = vst.msk [vmem:[#allocation0 + $0x1] ss:$8 sm:$0xf] %vm3_vm0, %v15_v3   ;;  %20 = vst.msk [vmem:[#allocation0 + $0x1] ss:$8 sm:$0xf0] %vm3_vm0, %v15_v3  }
  0x78   :  { %v41_v4 = vpop.permute.xlu1 %40   ;;  %v24_v5 = vpop.permute.xlu0 %23  }
  0x79   :  { %44 = vst.msk [vmem:[#allocation0 + $0x42] ss:$8 sm:$0xf] %vm3_vm0, %v41_v4   ;;  %46 = vst.msk [vmem:[#allocation0 + $0x42] ss:$8 sm:$0xf0] %vm3_vm0, %v41_v4  }
  0x7a   :  { %27 = vst.msk [vmem:[#allocation0 + $0x41] ss:$8 sm:$0xf] %vm3_vm0, %v24_v5   ;;  %29 = vst.msk [vmem:[#allocation0 + $0x41] ss:$8 sm:$0xf0] %vm3_vm0, %v24_v5  }
  0x7c   :  { %v58_v6 = vpop.permute.xlu1 %57   ;;  %v49_v7 = vpop.permute.xlu0 %48  }
  0x7d   :  { %61 = vst.msk [vmem:[#allocation0 + $0x43] ss:$8 sm:$0xf] %vm3_vm0, %v58_v6   ;;  %63 = vst.msk [vmem:[#allocation0 + $0x43] ss:$8 sm:$0xf0] %vm3_vm0, %v58_v6  }
  0x7e   :  { %52 = vst.msk [vmem:[#allocation0 + $0x3] ss:$8 sm:$0xf] %vm3_vm0, %v49_v7   ;;  %54 = vst.msk [vmem:[#allocation0 + $0x3] ss:$8 sm:$0xf0] %vm3_vm0, %v49_v7  }
  0x84   :  { %v112_v8 = vld [vmem:[#allocation0 + $0x40] sm:$0xf]  ;;  %v118_v9 = vld [vmem:[#allocation0 + $0x48] sm:$0xf]  ;;  %v124_v10 = vld [vmem:[#allocation0 + $0x50] sm:$0xf] }
  0x85   :  { %184 = vst [vmem:[%s279_s1 + $0x20] sm:$0xf] %v112_v8  ;;  %185 = vst [vmem:[%s279_s1 + $0x24] sm:$0xf] %v118_v9  ;;  %v130_v11 = vld [vmem:[#allocation0 + $0x58] sm:$0xf] }
  0x86   :  { %186 = vst [vmem:[%s279_s1 + $0x28] sm:$0xf] %v124_v10  ;;  %v136_v12 = vld [vmem:[#allocation0 + $0x60] sm:$0xf]  ;;  %v142_v13 = vld [vmem:[#allocation0 + $0x68] sm:$0xf] }
  0x87   :  { %187 = vst [vmem:[%s279_s1 + $0x2c] sm:$0xf] %v130_v11  ;;  %188 = vst [vmem:[%s279_s1 + $0x30] sm:$0xf] %v136_v12  ;;  %v148_v14 = vld [vmem:[#allocation0 + $0x70] sm:$0xf] }
  0x88   :  { %189 = vst [vmem:[%s279_s1 + $0x34] sm:$0xf] %v142_v13  ;;  %v154_v15 = vld [vmem:[#allocation0 + $0x78] sm:$0xf]  ;;  %v67_v16 = vld [vmem:[#allocation0] sm:$0xf] }
  0x89   :  { %190 = vst [vmem:[%s279_s1 + $0x38] sm:$0xf] %v148_v14  ;;  %191 = vst [vmem:[%s279_s1 + $0x3c] sm:$0xf] %v154_v15  ;;  %v71_v17 = vld [vmem:[#allocation0 + $0x8] sm:$0xf] }
  0x8a   :  { %69 = vst [vmem:[%s279_s1] sm:$0xf] %v67_v16  ;;  %v76_v18 = vld [vmem:[#allocation0 + $0x10] sm:$0xf]  ;;  %v82_v19 = vld [vmem:[#allocation0 + $0x18] sm:$0xf] }
  0x8b   :  { %177 = vst [vmem:[%s279_s1 + $0x4] sm:$0xf] %v71_v17  ;;  %178 = vst [vmem:[%s279_s1 + $0x8] sm:$0xf] %v76_v18  ;;  %v88_v20 = vld [vmem:[#allocation0 + $0x20] sm:$0xf] }
  0x8c   :  { %179 = vst [vmem:[%s279_s1 + $0xc] sm:$0xf] %v82_v19  ;;  %v94_v21 = vld [vmem:[#allocation0 + $0x28] sm:$0xf]  ;;  %v100_v22 = vld [vmem:[#allocation0 + $0x30] sm:$0xf] }
  0x8d   :  { %180 = vst [vmem:[%s279_s1 + $0x10] sm:$0xf] %v88_v20  ;;  %181 = vst [vmem:[%s279_s1 + $0x14] sm:$0xf] %v94_v21  ;;  %v106_v23 = vld [vmem:[#allocation0 + $0x38] sm:$0xf] }
  0x8e   :  { %182 = vst [vmem:[%s279_s1 + $0x18] sm:$0xf] %v100_v22  ;;  %183 = vst [vmem:[%s279_s1 + $0x1c] sm:$0xf] %v106_v23 }

// kernel: decoder_layer_forward.3
= control target key start
LH: loop header
LB: loop body
LE: loop exit
PB: predicated region body
PF: predicated region fallthrough
CT: control target
= control target key end

     0   :  { %19 = vsyncpa [#allocation3], 0  ;;  %s1877_s0 = inlined_call_operand.vmem [shape: f32[2,8,32], index: 0, kind: input, shape index: {}]   ;;  %s1878_s1 = inlined_call_operand.vmem [shape: f32[2,8,32], index: 1, kind: input, shape index: {}]   ;;  %s1879_s2 = inlined_call_operand.vmem [shape: bf16[32,64], index: 2, kind: input, shape index: {}]   ;;  %s1880_s3 = inlined_call_operand.vmem [shape: f32[1,64], index: 3, kind: input, shape index: {}]   ;;  %s1881_s4 = inlined_call_operand.hbm [shape: bf16[32,32], index: 4, kind: input, shape index: {}]   ;;  %s1882_s5 = inlined_call_operand.vmem [shape: f32[1,32], index: 5, kind: input, shape index: {}]   ;;  %s1883_s6 = inlined_call_operand.vmem [shape: bf16[32,32], index: 6, kind: input, shape index: {}]   ;;  %s1884_s7 = inlined_call_operand.vmem [shape: f32[1,32], index: 7, kind: input, shape index: {}]   ;;  %s1885_s8 = inlined_call_operand.hbm [shape: f32[1,32], index: 8, kind: input, shape index: {}]   ;;  %s1886_s9 = inlined_call_operand.vmem [shape: f32[1,32], index: 9, kind: input, shape index: {}]   ;;  %s1887_s10 = inlined_call_operand.vmem [shape: bf16[32,128], index: 10, kind: input, shape index: {}]   ;;  %s1888_s11 = inlined_call_operand.vmem [shape: f32[1,128], index: 11, kind: input, shape index: {}]   ;;  %s1889_s12 = inlined_call_operand.vmem [shape: bf16[2,8,32], index: 12, kind: output, shape index: {0}]   ;;  %s1890_s13 = inlined_call_operand.vmem [shape: f32[2,8,128], index: 13, kind: output, shape index: {1}]  }
   0x1   :  { %20 = vsyncpa [#allocation5], 0  ;;  %s1412_s25 = smov [#allocation2]   ;;  %s1364_s29 = scalar_lea.hbm %s1881_s4, 256 }
   0x2   :  { %s34_s26 = sshll.u32 %s1412_s25, 4  ;;  %p1365_p0 = scmp.ne.s32.totalorder %s1881_s4, %s1364_s29  ;;  %s35_s26 = int_to_ptr.vmem [resolvable:$true] %s34_s26 }
   0x3   :  { %p1368_p1 = scmp.lt.u32.totalorder %s1364_s29, %s1881_s4 }
   0x5   :  { %p1370_p2 = pnand %p1368_p1, %p1365_p0 }
   0x7   :  { %1373 = shalt.err (!%p1370_p2)
}
   0x8   :  { %s1374_s17 = scalar_lea.vmem %s35_s26, 256  ;;  %p1379_p4 = scmp.lt.s32.totalorder %s35_s26, %s35_s26 }
   0x9   :  { %p1375_p3 = scmp.ne.s32.totalorder %s35_s26, %s1374_s17  ;;  %p1380_p5 = scmp.lt.s32.totalorder %s1374_s17, %s1374_s17 }
   0xb   :  { %p1381_p6 = por %p1380_p5, %p1379_p4 }
   0xd   :  { %p1382_p7 = pnand %p1381_p6, %p1375_p3 }
   0xf   :  { %1385 = shalt.err (!%p1382_p7)
}
  0x10   :  { %s1413_s18 = smov 64   ;;  %s1414_s19 = smov 4  }
  0x11   :  { %40 = dma.hbm_to_vmem [thread:$0]  %s1881_s4, 256, %s35_s26, [#allocation3], %s1413_s18, %s1413_s18, %s1414_s19  }
  0x12   :  { %s1415_s22 = smov [#allocation4]   ;;  %s1386_s27 = scalar_lea.hbm %s1885_s8, 16 }
  0x13   :  { %s53_s23 = sshll.u32 %s1415_s22, 4  ;;  %p1387_p8 = scmp.ne.s32.totalorder %s1885_s8, %s1386_s27  ;;  %s54_s23 = int_to_ptr.vmem [resolvable:$true] %s53_s23 }
  0x14   :  { %p1390_p9 = scmp.lt.u32.totalorder %s1386_s27, %s1885_s8 }
  0x16   :  { %p1392_p10 = pnand %p1390_p9, %p1387_p8 }
  0x18   :  { %1395 = shalt.err (!%p1392_p10)
}
  0x19   :  { %s1396_s15 = scalar_lea.vmem %s54_s23, 16  ;;  %s1400_s4 = scalar_lea.vmem %s54_s23, 32 }
  0x1a   :  { %p1397_p11 = scmp.ne.s32.totalorder %s54_s23, %s1396_s15  ;;  %p1401_p12 = scmp.lt.s32.totalorder %s54_s23, %s54_s23 }
  0x1b   :  { %p1402_p13 = scmp.lt.s32.totalorder %s1400_s4, %s1396_s15 }
  0x1d   :  { %p1403_p0 = por %p1402_p13, %p1401_p12 }
  0x1f   :  { %p1404_p1 = pnand %p1403_p0, %p1397_p11 }
  0x21   :  { %1407 = shalt.err (!%p1404_p1)
}
  0x22   :  { %56 = dma.hbm_to_vmem [thread:$0]  %s1885_s8, 16, %s54_s23, [#allocation5]  }
  0x23   :  { %1408 = dma.done.wait [#allocation3], 256  }
  0x24   :  { %1409 = vsyncadd [#allocation3], 4294967040 }
  0x25   :  { %1410 = dma.done.wait [#allocation5], 16  }
  0x26   :  { %1411 = vsyncadd [#allocation5], 4294967280  ;;  %v1416_v0 = vmov 0.0   ;;  %vm1417_vm0 = vmmov 0   ;;  %v1276_v1 = vld [vmem:[%s1879_s2] sm:$0xff]   ;;  %v1277_v2 = vld [vmem:[%s1879_s2 + $0x8] sm:$0xff]   ;;  %v215_v10 = vlaneseq }
  0x27   :  { %1213 = vmatprep.subr.bf16.mxu0 %v1416_v0  ;;  %1217 = vmatprep.mubr.msk.bf16.mxu0 %vm1417_vm0, %v1416_v0  ;;  %v1539_v3 = vld [vmem:[%s1877_s0] sm:$0xff]  ;;  %v1544_v4 = vld [vmem:[%s1877_s0 + $0x8] sm:$0xff]  ;;  %vm100_vm1 = vcmask 261120   ;;  %v1418_v19 = vmov 1.0|1.0   ;;  %s1419_s29 = smov 96  }
  0x28   :  { %1221 = vmatprep.subr.bf16.mxu1 %v1416_v0  ;;  %1225 = vmatprep.mubr.msk.bf16.mxu1 %vm1417_vm0, %v1416_v0  ;;  %v1549_v5 = vld [vmem:[%s1878_s1] sm:$0xff]  ;;  %v1555_v6 = vld [vmem:[%s1878_s1 + $0x8] sm:$0xff]  ;;  %v221_v11 = vand.u32 127, %v215_v10  ;;  %v1562_v12 = vshrl.u32 %v215_v10, 7  ;;  %v145_v39 = vpack.c.bf16 %v1544_v4, %v1539_v3  ;;  %s1420_s25 = smov 104   ;;  %s1421_s27 = smov 120  }
  0x29   :  { %1214 = vmatpush3.bf16.msra.mxu0 %v1276_v1  ;;  %v74_v7 = vadd.f32 %v1549_v5, %v1539_v3  ;;  %v75_v8 = vadd.f32 %v1555_v6, %v1544_v4  ;;  %v1163_v20 = vld [vmem:[%s1880_s3] ss:$0 sm:$0xff]  ;;  %v1279_v38 = vld [vmem:[#allocation2 + $0x8] sm:$0xff]   ;;  %s1426_s28 = smov 16   ;;  %s1427_s2 = smov 24  }
  0x2a   :  { %1215 = vmatprep.subr.bf16.mxu0 %v1416_v0  ;;  %v227_v13 = vadd.s32 1, %v221_v11  ;;  %v217_v14 = vadd.s32 8, %v1562_v12  ;;  %v222_v15 = vmul.u32 8, %v221_v11  ;;  %v218_v17 = vadd.s32 16, %v1562_v12  ;;  %v1278_v37 = vld [vmem:[#allocation2] sm:$0xff]  }
  0x2b   :  { %v76_v9 = vpack.c.bf16 %v75_v8, %v74_v7  ;;  %v219_v18 = vadd.s32 24, %v1562_v12  ;;  %1222 = vmatpush3.bf16.msra.mxu1 %v1278_v37  ;;  %v249_v40 = vadd.s32 1, %v1562_v12  ;;  %v247_v41 = vmul.u32 8, %v1562_v12 }
  0x2c   :  { %v228_v16 = vmul.u32 8, %v227_v13  ;;  %vm223_vm2 = vcmp.ge.s32.totalorder %v1562_v12, %v222_v15  ;;  %vm224_vm3 = vcmp.ge.s32.totalorder %v217_v14, %v222_v15  ;;  %vm225_vm9 = vcmp.ge.s32.totalorder %v218_v17, %v222_v15  ;;  %1223 = vmatprep.subr.bf16.mxu1 %v1416_v0 }
  0x2d   :  { %1216 = vmatpush3.bf16.msra.mxu0 %v1277_v2  ;;  %vm226_vm10 = vcmp.ge.s32.totalorder %v219_v18, %v222_v15  ;;  %v250_v42 = vmul.u32 8, %v249_v40 }
  0x2e   :  { %vm229_vm4 = vcmp.lt.s32.totalorder %v1562_v12, %v228_v16  ;;  %vm230_vm5 = vcmp.lt.s32.totalorder %v217_v14, %v228_v16  ;;  %vm231_vm11 = vcmp.lt.s32.totalorder %v218_v17, %v228_v16  ;;  %vm232_vm12 = vcmp.lt.s32.totalorder %v219_v18, %v228_v16 }
  0x2f   :  { %vm233_vm6 = vmand %vm223_vm2, %vm229_vm4  ;;  %1224 = vmatpush3.bf16.msra.mxu1 %v1279_v38  ;;  %vm248_vm2 = vcmp.ge.s32.totalorder %v221_v11, %v247_v41 }
  0x30   :  { %1218 = vmatmul.mubr.msk.bf16.vlgmr.msra.gmra.mrb[0].mxu0 %vm100_vm1, %v76_v9  ;;  %vm234_vm7 = vmand %vm224_vm3, %vm230_vm5  ;;  %vm251_vm3 = vcmp.lt.s32.totalorder %v221_v11, %v250_v42  ;;  %vm364_vm5 = vcmask 1041408  }
  0x31   :  { %vm1176_vm8 = vmpackc.low %vm234_vm7, %vm233_vm6  ;;  %vm325_vm6 = vcmask 31744   ;;  %vm1128_vm7 = vcmask 64512  }
  0x32   :  { %1229 = vmatprep.subr.msk.bf16.mxu0 %vm1176_vm8, %v1418_v19  ;;  %vm235_vm13 = vmand %vm225_vm9, %vm231_vm11  ;;  %1226 = vmatmul.mubr.msk.bf16.vlgmr.msra.gmra.mrb[0].mxu1 %vm100_vm1, %v145_v39  ;;  %vm1134_vm9 = vcmask 195584   ;;  %vm1148_vm11 = vcmask 785408  }
  0x33   :  { %1230 = vmatpush3.bf16.msk.msra.mxu0 %vm1176_vm8, %v1418_v19  ;;  %vm236_vm14 = vmand %vm226_vm10, %vm232_vm12  ;;  %vm1131_vm8 = vcmask 130048   ;;  %vm1145_vm10 = vcmask 523264  }
  0x34   :  { %vm1178_vm15 = vmpackc.low %vm236_vm14, %vm235_vm13 }
  0x35   :  { %1231 = vmatprep.subr.msk.bf16.mxu0 %vm1178_vm15, %v1418_v19  ;;  %vm252_vm4 = vmand %vm248_vm2, %vm251_vm3 }
  0x36   :  { %v1175_v43 = vsel %vm252_vm4, 1.0, %v1416_v0 }
  0x37   :  { %1232 = vmatpush3.bf16.msk.msra.mxu0 %vm1178_vm15, %v1418_v19  ;;  %v255_v44 = vpack.c.bf16 %v1175_v43, %v1175_v43 }
  0x38   :  { %1243 = vmatprep.subr.bf16.mxu0 %v1416_v0 }
  0x39   :  { %1259 = vmatprep.subr.msk.bf16.mxu1 %vm364_vm5, %v255_v44  ;;  %v366_v45 = vsel %vm364_vm5, %v255_v44, 0 }
  0x3a   :  { %1238 = vmatpush3.bf16.msra.mxu1 %v366_v45 }
  0x3b   :  { %1251 = vmatprep.subr.bf16.mxu1 %v1416_v0 }
 0x103   :  { %v138_v21 = vpop.f32.mrb[0].mxu0 }
 0x104   :  { %v139_v22 = vadd.f32 %v1163_v20, %v138_v21  ;;  %v1219_v23 = vpop.f32.mrb[1].mxu0 }
 0x105   :  { %v141_v24 = vpop.f32.mrb[2].mxu0 }
 0x106   :  { %258 = vrot.lane.b32.xlu0 %v139_v22, %s1419_s29  ;;  %v1220_v25 = vpop.f32.mrb[3].mxu0  ;;  %v142_v26 = vadd.f32 %v1163_v20, %v141_v24  ;;  %v213_v28 = vmul.f32 0.35355338, %v139_v22  ;;  %v206_v24 = vpop.f32.mrb[0].mxu1 }
 0x107   :  { %v1227_v25 = vpop.f32.mrb[1].mxu1 }
 0x108   :  { %v214_v29 = vmul.f32 0.35355338, %v142_v26 }
 0x10a   :  { %260 = vrot.lane.b32.xlu0 %v142_v26, %s1419_s29  ;;  %v209_v26 = vpop.f32.mrb[2].mxu1 }
 0x178   :  { %v259_v27 = vpop.permute.xlu0 %258 }
 0x179   :  { %v264_v31 = vmul.f32 %v259_v27, %v213_v28  ;;  %v266_v32 = vmul.f32 %v259_v27, %v214_v29  ;;  %v1228_v27 = vpop.f32.mrb[3].mxu1 }
 0x17c   :  { %v261_v30 = vpop.permute.xlu0 %260 }
 0x17d   :  { %v265_v33 = vmul.f32 %v261_v30, %v213_v28  ;;  %v267_v34 = vmul.f32 %v261_v30, %v214_v29  ;;  %v1280_v28 = vld [vmem:[%s1883_s6] sm:$0xff]   ;;  %v1281_v29 = vld [vmem:[%s1883_s6 + $0x8] sm:$0xff]  }
 0x17e   :  { %v1167_v30 = vld [vmem:[%s1882_s5] ss:$0 sm:$0xff] }
 0x17f   :  { %v268_v35 = vpack.c.bf16 %v265_v33, %v264_v31  ;;  %v269_v36 = vpack.c.bf16 %v267_v34, %v266_v32  ;;  %v207_v31 = vadd.f32 %v1167_v30, %v206_v24  ;;  %v210_v33 = vadd.f32 %v1167_v30, %v209_v26 }
 0x181   :  { %1233 = vmatprep.mubr.msk.bf16.mxu0 %vm100_vm1, %v268_v35 }
 0x182   :  { %1234 = vmatmul.mubr.msk.bf16.vlgmr.msra.gmra.mrb[4].mxu0 %vm100_vm1, %v269_v36 }
 0x183   :  { %1247 = vmatprep.mubr.msk.bf16.mxu0 %vm1417_vm0, %v1416_v0  ;;  %1244 = vmatpush3.bf16.msra.mxu0 %v1280_v28 }
 0x184   :  { %1245 = vmatprep.subr.bf16.mxu0 %v1416_v0 }
 0x187   :  { %1246 = vmatpush3.bf16.msra.mxu0 %v1281_v29 }
 0x255   :  { %v1235_v46 = vpop.f32.mrb[4].mxu0 }
 0x256   :  { %v310_v47 = vpop.f32.mrb[5].mxu0  ;;  %v329_v49 = vsel %vm325_vm6, %v1235_v46, -inf }
 0x257   :  { %v1236_v48 = vpop.f32.mrb[6].mxu0  ;;  %v326_v52 = vsel %vm325_vm6, %v310_v47, -inf }
 0x258   :  { %v330_v50 = vsel %vm325_vm6, %v1236_v48, -inf  ;;  %v313_v51 = vpop.f32.mrb[7].mxu0 }
 0x259   :  { %v331_v53 = vmax.f32 %v329_v49, %v330_v50  ;;  %v327_v54 = vsel %vm325_vm6, %v313_v51, -inf }
 0x25a   :  { %v328_v55 = vmax.f32 %v326_v52, %v327_v54 }
 0x25b   :  { %v334_v56 = vsub.f32 %v1235_v46, %v331_v53  ;;  %v335_v57 = vsub.f32 %v1236_v48, %v331_v53  ;;  %v1184_v48 = vld [vmem:[%s1884_s7] ss:$0 sm:$0xff] }
 0x25c   :  { %v332_v58 = vsub.f32 %v310_v47, %v328_v55  ;;  %v333_v59 = vsub.f32 %v313_v51, %v328_v55 }
 0x25d   :  { %v340_v60 = vmul.f32 1.442695, %v334_v56  ;;  %v342_v61 = vmul.f32 1.442695, %v335_v57 }
 0x25e   :  { %v336_v62 = vmul.f32 1.442695, %v332_v58  ;;  %v338_v63 = vmul.f32 1.442695, %v333_v59 }
 0x25f   :  { %1284 = vpow2.f32 %v340_v60 }
 0x260   :  { %1286 = vpow2.f32 %v342_v61 }
 0x261   :  { %1288 = vpow2.f32 %v336_v62 }
 0x262   :  { %1290 = vpow2.f32 %v338_v63 }
 0x269   :  { %v1285_v1 = vpop.eup %1284 }
 0x26a   :  { %v1287_v2 = vpop.eup %1286  ;;  %v347_v7 = vsel %vm325_vm6, %v1285_v1, 0.0 }
 0x26b   :  { %v1289_v8 = vpop.eup %1288  ;;  %v348_v9 = vsel %vm325_vm6, %v1287_v2, 0.0 }
 0x26c   :  { %v1291_v10 = vpop.eup %1290  ;;  %v349_v11 = vadd.f32 %v348_v9, %v347_v7  ;;  %v344_v13 = vsel %vm325_vm6, %v1289_v8, 0.0  ;;  %v1283_v9 = vld [vmem:[%s1887_s10 + $0x8] sm:$0xff]  }
 0x26d   :  { %v345_v14 = vsel %vm325_vm6, %v1291_v10, 0.0 }
 0x26e   :  { %1292 = vrcp.f32 %v349_v11  ;;  %v346_v15 = vadd.f32 %v345_v14, %v344_v13 }
 0x270   :  { %1294 = vrcp.f32 %v346_v15 }
 0x278   :  { %v1293_v16 = vpop.eup %1292 }
 0x279   :  { %v355_v17 = vmul.f32 %v1293_v16, %v1287_v2  ;;  %v354_v18 = vmul.f32 %v1293_v16, %v1285_v1 }
 0x27a   :  { %v1295_v19 = vpop.eup %1294 }
 0x27b   :  { %v352_v20 = vmul.f32 %v1295_v19, %v1289_v8  ;;  %v353_v21 = vmul.f32 %v1295_v19, %v1291_v10  ;;  %v357_v22 = vpack.c.bf16 %v355_v17, %v354_v18  ;;  %v1188_v18 = vld [vmem:[#allocation4] ss:$0 sm:$0xff] }
 0x27d   :  { %v356_v23 = vpack.c.bf16 %v353_v21, %v352_v20  ;;  %v1189_v20 = vld [vmem:[%s1886_s9] ss:$0 sm:$0xff] }
 0x27f   :  { %1239 = vmatprep.mubr.msk.bf16.mxu1 %vm325_vm6, %v356_v23 }
 0x280   :  { %1240 = vmatmul.mubr.msk.bf16.vlgmr.msra.gmra.mrb[4].mxu1 %vm325_vm6, %v357_v22 }
 0x281   :  { %1255 = vmatprep.mubr.msk.bf16.mxu1 %vm1417_vm0, %v1416_v0  ;;  %vm544_vm0 = vcmask 257024  }
 0x353   :  { %v1241_v32 = vpop.f32.mrb[4].mxu1 }
 0x354   :  { %v419_v34 = vmul.f32 %v1241_v32, %v207_v31  ;;  %v402_v35 = vpop.f32.mrb[5].mxu1  ;;  %v1190_v32 = vld [vmem:[%s1888_s11] ss:$0 sm:$0xff]  ;;  %s1425_s11 = smov 8  }
 0x355   :  { %v417_v36 = vmul.f32 %v402_v35, %v207_v31  ;;  %v1242_v37 = vpop.f32.mrb[6].mxu1 }
 0x356   :  { %v420_v38 = vmul.f32 %v1242_v37, %v210_v33  ;;  %v405_v39 = vpop.f32.mrb[7].mxu1  ;;  %v424_v41 = vsel %vm100_vm1, %v419_v34, 0.0 }
 0x357   :  { %v418_v40 = vmul.f32 %v405_v39, %v210_v33  ;;  %v421_v43 = vsel %vm100_vm1, %v417_v36, 0.0 }
 0x358   :  { %v425_v42 = vsel %vm100_vm1, %v420_v38, 0.0 }
 0x359   :  { %v426_v44 = vadd.f32 %v425_v42, %v424_v41  ;;  %v422_v45 = vsel %vm100_vm1, %v418_v40, 0.0 }
 0x35a   :  { %v423_v46 = vadd.f32 %v422_v45, %v421_v43 }
 0x35c   :  { %v427_v47 = vpack.c.bf16 %v426_v44, %v423_v46  ;;  %v1423_v44 = vmov 1983009808  }
 0x35d   :  { %v658_v45 = vunpack.c.l.s4 %v1423_v44 }
 0x35e   :  { %1248 = vmatmul.mubr.msk.bf16.vlgmr.msra.gmra.mrb[8].mxu0 %vm100_vm1, %v427_v47  ;;  %v1424_v47 = vmov 1934713408  }
 0x431   :  { %v488_v49 = vpop.f32.mrb[8].mxu0 }
 0x432   :  { %v489_v50 = vadd.f32 %v1184_v48, %v488_v49  ;;  %v1249_v51 = vpop.f32.mrb[9].mxu0  ;;  %v659_v49 = vunpack.c.0.s8 %v658_v45 }
 0x433   :  { %v491_v52 = vpop.f32.mrb[10].mxu0 }
 0x434   :  { %v492_v53 = vadd.f32 %v1184_v48, %v491_v52  ;;  %v1250_v54 = vpop.f32.mrb[11].mxu0  ;;  %v495_v55 = vadd.f32 %v489_v50, %v1539_v3  ;;  %v690_v48 = vunpack.c.l.s4 %v1424_v47 }
 0x436   :  { %v497_v56 = vsel %vm100_vm1, %v495_v55, 0.0  ;;  %v496_v57 = vadd.f32 %v492_v53, %v1544_v4  ;;  %v1282_v4 = vld [vmem:[%s1887_s10] sm:$0xff]   ;;  %v691_v52 = vunpack.c.0.s8 %v690_v48  ;;  %v1664_v53 = vsub.s32 %v659_v49, %v1562_v12 }
 0x437   :  { %498 = vadd.xlane.f32.xlu1 %v497_v56  ;;  %1252 = vmatpush3.bf16.msra.mxu1 %v1282_v4 }
 0x438   :  { %v500_v58 = vsel %vm100_vm1, %v496_v57, 0.0  ;;  %1253 = vmatprep.subr.bf16.mxu1 %v1416_v0 }
 0x43b   :  { %501 = vadd.xlane.f32.xlu1 %v500_v58  ;;  %1254 = vmatpush3.bf16.msra.mxu1 %v1283_v9 }
 0x4c4   :  { %v499_v59 = vpop.xlane.xlu1 %498 }
 0x4c5   :  { %v504_v60 = vmul.f32 0.03125, %v499_v59 }
 0x4c7   :  { %v506_v61 = vsub.f32 %v495_v55, %v504_v60  ;;  %v1667_v60 = vsub.s32 %v691_v52, %v1562_v12 }
 0x4c8   :  { %v502_v62 = vpop.xlane.xlu1 %501 }
 0x4c9   :  { %v505_v63 = vmul.f32 0.03125, %v502_v62  ;;  %v508_v1 = vmul.f32 %v506_v61, %v506_v61 }
 0x4cb   :  { %v507_v2 = vsub.f32 %v496_v57, %v505_v63  ;;  %v510_v7 = vsel %vm100_vm1, %v508_v1, 0.0 }
 0x4cc   :  { %511 = vadd.xlane.f32.xlu0 %v510_v7 }
 0x4cd   :  { %v509_v8 = vmul.f32 %v507_v2, %v507_v2 }
 0x4cf   :  { %v513_v3 = vsel %vm100_vm1, %v509_v8, 0.0 }
 0x4d0   :  { %514 = vadd.xlane.f32.xlu1 %v513_v3 }
 0x559   :  { %v512_v10 = vpop.xlane.xlu0 %511 }
 0x55a   :  { %v516_v11 = vmul.f32 0.03125, %v512_v10 }
 0x55c   :  { %v518_v13 = vadd.f32 1e-05, %v516_v11 }
 0x55d   :  { %v515_v14 = vpop.xlane.xlu1 %514 }
 0x55e   :  { %1296 = vrsqrt.f32 %v518_v13  ;;  %v517_v15 = vmul.f32 0.03125, %v515_v14 }
 0x560   :  { %v519_v16 = vadd.f32 1e-05, %v517_v15 }
 0x562   :  { %1298 = vrsqrt.f32 %v519_v16 }
 0x568   :  { %v1297_v17 = vpop.eup %1296 }
 0x569   :  { %v522_v19 = vmul.f32 %v1297_v17, %v506_v61 }
 0x56b   :  { %v531_v21 = vmul.f32 %v1188_v18, %v522_v19 }
 0x56c   :  { %v1299_v22 = vpop.eup %1298 }
 0x56d   :  { %v523_v23 = vmul.f32 %v1299_v22, %v507_v2  ;;  %v540_v24 = vadd.f32 %v1189_v20, %v531_v21 }
 0x56f   :  { %v532_v25 = vmul.f32 %v1188_v18, %v523_v23  ;;  %v542_v26 = vpack.c.bf16 %v540_v24, %v540_v24  ;;  %v547_v29 = vadd.f32 %v540_v24, %v1549_v5 }
 0x571   :  { %v541_v27 = vadd.f32 %v1189_v20, %v532_v25  ;;  %545 = vst.msk [vmem:[%s1889_s12] sm:$0xf] %vm544_vm0, %v542_v26 }
 0x573   :  { %v543_v28 = vpack.c.bf16 %v541_v27, %v541_v27  ;;  %v548_v30 = vadd.f32 %v541_v27, %v1555_v6 }
 0x575   :  { %546 = vst.msk [vmem:[%s1889_s12 + $0x4] sm:$0xf] %vm544_vm0, %v543_v28  ;;  %v549_v31 = vpack.c.bf16 %v548_v30, %v547_v29  ;;  %s1422_s12 = smov 112  }
 0x577   :  { %1256 = vmatmul.mubr.msk.bf16.vlgmr.msra.gmra.mrb[8].mxu1 %vm100_vm1, %v549_v31  ;;  %vm791_vm1 = vcmask 60416  }
 0x64a   :  { %v610_v33 = vpop.f32.mrb[8].mxu1 }
 0x64b   :  { %v1643_v34 = vadd.f32 %v1190_v32, %v610_v33  ;;  %v1257_v35 = vpop.f32.mrb[9].mxu1 }
 0x64c   :  { %v613_v36 = vpop.f32.mrb[10].mxu1 }
 0x64d   :  { %627 = vrot.lane.b32.xlu0 %v1643_v34, %s1420_s25  ;;  %619 = vrot.lane.b32.xlu1 %v1643_v34, %s1421_s27  ;;  %v1258_v5 = vpop.f32.mrb[11].mxu1  ;;  %v1648_v6 = vadd.f32 %v1190_v32, %v613_v36 }
 0x651   :  { %623 = vrot.lane.b32.xlu1 %v1643_v34, %s1422_s12 }
 0x655   :  { %621 = vrot.lane.b32.xlu1 %v1648_v6, %s1421_s27 }
 0x659   :  { %625 = vrot.lane.b32.xlu1 %v1648_v6, %s1422_s12 }
 0x65d   :  { %629 = vrot.lane.b32.xlu1 %v1648_v6, %s1420_s25 }
 0x661   :  { %631 = vrot.lane.b32.xlu1 %v1643_v34, %s1413_s18 }
 0x665   :  { %633 = vrot.lane.b32.xlu1 %v1648_v6, %s1413_s18 }
 0x6bf   :  { %v620_v37 = vpop.permute.xlu1 %619  ;;  %v628_v39 = vpop.permute.xlu0 %627 }
 0x6c0   :  { %635 = vrot.lane.b32.xlu1 %v620_v37, %s1413_s18 }
 0x6c3   :  { %v624_v38 = vpop.permute.xlu1 %623 }
 0x6c4   :  { %639 = vrot.lane.b32.xlu0 %v624_v38, %s1413_s18 }
 0x6c7   :  { %v622_v40 = vpop.permute.xlu1 %621 }
 0x6c8   :  { %643 = vrot.lane.b32.xlu0 %v628_v39, %s1413_s18  ;;  %637 = vrot.lane.b32.xlu1 %v622_v40, %s1413_s18 }
 0x6cb   :  { %v626_v41 = vpop.permute.xlu1 %625 }
 0x6cc   :  { %641 = vrot.lane.b32.xlu1 %v626_v41, %s1413_s18 }
 0x6cf   :  { %v630_v42 = vpop.permute.xlu1 %629 }
 0x6d0   :  { %645 = vrot.lane.b32.xlu1 %v630_v42, %s1413_s18 }
 0x6d3   :  { %v632_v43 = vpop.permute.xlu1 %631 }
 0x6d7   :  { %v634_v46 = vpop.permute.xlu1 %633 }
 0x732   :  { %v636_v50 = vpop.permute.xlu1 %635 }
 0x736   :  { %v640_v51 = vpop.permute.xlu0 %639 }
 0x737   :  { %v655_v54 = vcombine.low %v632_v43, %v640_v51  ;;  %v656_v55 = vcombine.high %v632_v43, %v640_v51 }
 0x739   :  { %v663_v61 = vrot.slane %v655_v54, %v1664_v53  ;;  %v670_v62 = vrot.slane %v656_v55, %v1664_v53 }
 0x73a   :  { %v644_v56 = vpop.permute.xlu0 %643  ;;  %v638_v57 = vpop.permute.xlu1 %637 }
 0x73b   :  { %v671_v58 = vcombine.low %v636_v50, %v644_v56  ;;  %v672_v59 = vcombine.high %v636_v50, %v644_v56 }
 0x73d   :  { %v679_v63 = vrot.slane %v671_v58, %v1664_v53  ;;  %v686_v1 = vrot.slane %v672_v59, %v1664_v53 }
 0x73e   :  { %v642_v2 = vpop.permute.xlu1 %641 }
 0x73f   :  { %v687_v7 = vcombine.low %v663_v61, %v679_v63  ;;  %v688_v8 = vcombine.high %v663_v61, %v679_v63  ;;  %v703_v3 = vcombine.low %v670_v62, %v686_v1  ;;  %v704_v4 = vcombine.high %v670_v62, %v686_v1 }
 0x740   :  { %v723_v9 = vcombine.low %v634_v46, %v642_v2  ;;  %v724_v26 = vcombine.high %v634_v46, %v642_v2 }
 0x741   :  { %v1674_v10 = vrot.slane %v703_v3, %v1667_v60  ;;  %v695_v12 = vrot.slane %v687_v7, %v1667_v60  ;;  %v1678_v13 = vrot.slane %v704_v4, %v1667_v60  ;;  %v1684_v17 = vrot.slane %v688_v8, %v1667_v60 }
 0x742   :  { %v646_v11 = vpop.permute.xlu1 %645  ;;  %v731_v18 = vrot.slane %v723_v9, %v1664_v53  ;;  %v738_v33 = vrot.slane %v724_v26, %v1664_v53 }
 0x743   :  { %v739_v14 = vcombine.low %v638_v57, %v646_v11  ;;  %v804_v15 = vsel %vm791_vm1, %v1674_v10, -inf  ;;  %v792_v16 = vsel %vm791_vm1, %v695_v12, -inf  ;;  %v740_v20 = vcombine.high %v638_v57, %v646_v11 }
 0x744   :  { %805 = vmax.xlane.f32.xlu1 %v804_v15  ;;  %793 = vmax.xlane.f32.xlu0 %v792_v16  ;;  %v810_v21 = vsel %vm791_vm1, %v1678_v13, -inf  ;;  %v798_v23 = vsel %vm791_vm1, %v1684_v17, -inf  ;;  %v1694_v24 = vcombine.high %v1684_v17, %v1416_v0  ;;  %v719_v25 = vcombine.high %v695_v12, %v1416_v0 }
 0x745   :  { %v747_v19 = vrot.slane %v739_v14, %v1664_v53  ;;  %v754_v27 = vrot.slane %v740_v20, %v1664_v53  ;;  %v1700_v28 = vcombine.high %v1674_v10, %v1416_v0  ;;  %v1709_v35 = vcombine.high %v1678_v13, %v1416_v0 }
 0x746   :  { %v801_v30 = vsel %vm791_vm1, %v1694_v24, -inf  ;;  %v795_v31 = vsel %vm791_vm1, %v719_v25, -inf }
 0x747   :  { %v755_v22 = vcombine.low %v731_v18, %v747_v19  ;;  %v756_v29 = vcombine.high %v731_v18, %v747_v19  ;;  %v771_v36 = vcombine.low %v738_v33, %v754_v27  ;;  %v807_v5 = vsel %vm791_vm1, %v1700_v28, -inf }
 0x748   :  { %811 = vmax.xlane.f32.xlu1 %v810_v21  ;;  %799 = vmax.xlane.f32.xlu0 %v798_v23  ;;  %v772_v39 = vcombine.high %v738_v33, %v754_v27  ;;  %v813_v40 = vsel %vm791_vm1, %v1709_v35, -inf }
 0x749   :  { %v763_v32 = vrot.slane %v755_v22, %v1667_v60  ;;  %v1715_v38 = vrot.slane %v756_v29, %v1667_v60  ;;  %v1722_v42 = vrot.slane %v771_v36, %v1667_v60 }
 0x74a   :  { %v1732_v46 = vrot.slane %v772_v39, %v1667_v60 }
 0x74b   :  { %v816_v37 = vsel %vm791_vm1, %v763_v32, -inf  ;;  %v822_v41 = vsel %vm791_vm1, %v1715_v38, -inf  ;;  %v1725_v43 = vcombine.high %v763_v32, %v1416_v0  ;;  %v828_v44 = vsel %vm791_vm1, %v1722_v42, -inf }
 0x74c   :  { %802 = vmax.xlane.f32.xlu0 %v801_v30  ;;  %796 = vmax.xlane.f32.xlu1 %v795_v31  ;;  %v1736_v47 = vcombine.high %v1715_v38, %v1416_v0  ;;  %v834_v48 = vsel %vm791_vm1, %v1732_v46, -inf  ;;  %v1744_v50 = vcombine.high %v1722_v42, %v1416_v0  ;;  %v1750_v52 = vcombine.high %v1732_v46, %v1416_v0 }
 0x74d   :  { %v819_v45 = vsel %vm791_vm1, %v1725_v43, -inf }
 0x74e   :  { %v825_v49 = vsel %vm791_vm1, %v1736_v47, -inf  ;;  %v831_v51 = vsel %vm791_vm1, %v1744_v50, -inf  ;;  %v837_v54 = vsel %vm791_vm1, %v1750_v52, -inf }
 0x750   :  { %808 = vmax.xlane.f32.xlu0 %v807_v5  ;;  %817 = vmax.xlane.f32.xlu1 %v816_v37 }
 0x754   :  { %814 = vmax.xlane.f32.xlu0 %v813_v40  ;;  %823 = vmax.xlane.f32.xlu1 %v822_v41 }
 0x758   :  { %829 = vmax.xlane.f32.xlu1 %v828_v44  ;;  %820 = vmax.xlane.f32.xlu0 %v819_v45 }
 0x75c   :  { %835 = vmax.xlane.f32.xlu1 %v834_v48  ;;  %826 = vmax.xlane.f32.xlu0 %v825_v49 }
 0x760   :  { %832 = vmax.xlane.f32.xlu0 %v831_v51 }
 0x764   :  { %838 = vmax.xlane.f32.xlu0 %v837_v54 }
 0x7d1   :  { %v794_v55 = vpop.xlane.xlu0 %793  ;;  %v806_v56 = vpop.xlane.xlu1 %805 }
 0x7d2   :  { %v840_v57 = vsub.f32 %v695_v12, %v794_v55  ;;  %v844_v59 = vsub.f32 %v1674_v10, %v806_v56 }
 0x7d4   :  { %v856_v58 = vmul.f32 1.442695, %v840_v57  ;;  %v864_v1 = vmul.f32 1.442695, %v844_v59 }
 0x7d5   :  { %v800_v61 = vpop.xlane.xlu0 %799  ;;  %v812_v62 = vpop.xlane.xlu1 %811 }
 0x7d6   :  { %1300 = vpow2.f32 %v856_v58  ;;  %v842_v63 = vsub.f32 %v1684_v17, %v800_v61  ;;  %v846_v0 = vsub.f32 %v1678_v13, %v812_v62 }
 0x7d8   :  { %v860_v2 = vmul.f32 1.442695, %v842_v63  ;;  %v868_v9 = vmul.f32 1.442695, %v846_v0 }
 0x7d9   :  { %v803_v7 = vpop.xlane.xlu0 %802  ;;  %v797_v8 = vpop.xlane.xlu1 %796 }
 0x7da   :  { %1302 = vpow2.f32 %v860_v2  ;;  %v843_v3 = vsub.f32 %v1694_v24, %v803_v7  ;;  %v841_v4 = vsub.f32 %v719_v25, %v797_v8 }
 0x7db   :  { %1304 = vpow2.f32 %v864_v1 }
 0x7dc   :  { %v858_v12 = vmul.f32 1.442695, %v841_v4  ;;  %v862_v11 = vmul.f32 1.442695, %v843_v3 }
 0x7dd   :  { %v809_v10 = vpop.xlane.xlu0 %808  ;;  %v818_v14 = vpop.xlane.xlu1 %817 }
 0x7de   :  { %v845_v15 = vsub.f32 %v1700_v28, %v809_v10  ;;  %v848_v16 = vsub.f32 %v763_v32, %v818_v14  ;;  %1306 = vpow2.f32 %v858_v12 }
 0x7df   :  { %1308 = vpow2.f32 %v868_v9 }
 0x7e0   :  { %v1759_v17 = vpop.eup %1300  ;;  %v872_v13 = vmul.f32 1.442695, %v848_v16  ;;  %1310 = vpow2.f32 %v862_v11  ;;  %v866_v18 = vmul.f32 1.442695, %v845_v15 }
 0x7e1   :  { %v815_v19 = vpop.xlane.xlu0 %814  ;;  %v824_v20 = vpop.xlane.xlu1 %823  ;;  %v888_v21 = vsel %vm791_vm1, %v1759_v17, 0.0 }
 0x7e2   :  { %v847_v22 = vsub.f32 %v1709_v35, %v815_v19  ;;  %v850_v23 = vsub.f32 %v1715_v38, %v824_v20  ;;  %889 = vadd.xlane.f32.xlu1 %v888_v21  ;;  %1312 = vpow2.f32 %v872_v13 }
 0x7e3   :  { %1314 = vpow2.f32 %v866_v18 }
 0x7e4   :  { %v1765_v24 = vpop.eup %1302  ;;  %v876_v25 = vmul.f32 1.442695, %v850_v23  ;;  %v870_v26 = vmul.f32 1.442695, %v847_v22 }
 0x7e5   :  { %v821_v27 = vpop.xlane.xlu0 %820  ;;  %v830_v28 = vpop.xlane.xlu1 %829  ;;  %v894_v29 = vsel %vm791_vm1, %v1765_v24, 0.0 }
 0x7e6   :  { %v1769_v30 = vpop.eup %1304  ;;  %v849_v31 = vsub.f32 %v1725_v43, %v821_v27  ;;  %v852_v32 = vsub.f32 %v1722_v42, %v830_v28  ;;  %895 = vadd.xlane.f32.xlu1 %v894_v29  ;;  %1316 = vpow2.f32 %v876_v25 }
 0x7e7   :  { %1318 = vpow2.f32 %v870_v26  ;;  %v900_v38 = vsel %vm791_vm1, %v1769_v30, 0.0 }
 0x7e8   :  { %v880_v33 = vmul.f32 1.442695, %v852_v32  ;;  %v1773_v35 = vpop.eup %1306  ;;  %v874_v36 = vmul.f32 1.442695, %v849_v31 }
 0x7e9   :  { %v827_v5 = vpop.xlane.xlu0 %826  ;;  %v836_v37 = vpop.xlane.xlu1 %835  ;;  %v891_v42 = vsel %vm791_vm1, %v1773_v35, 0.0 }
 0x7ea   :  { %v1777_v39 = vpop.eup %1308  ;;  %v851_v40 = vsub.f32 %v1736_v47, %v827_v5  ;;  %v854_v41 = vsub.f32 %v1732_v46, %v836_v37  ;;  %901 = vadd.xlane.f32.xlu1 %v900_v38  ;;  %892 = vadd.xlane.f32.xlu0 %v891_v42  ;;  %1320 = vpow2.f32 %v880_v33 }
 0x7eb   :  { %v1783_v43 = vpop.eup %1310  ;;  %1322 = vpow2.f32 %v874_v36  ;;  %v906_v49 = vsel %vm791_vm1, %v1777_v39, 0.0 }
 0x7ec   :  { %v884_v44 = vmul.f32 1.442695, %v854_v41  ;;  %v878_v45 = vmul.f32 1.442695, %v851_v40  ;;  %v1787_v51 = vpop.eup %1312  ;;  %v897_v46 = vsel %vm791_vm1, %v1783_v43, 0.0 }
 0x7ed   :  { %v833_v48 = vpop.xlane.xlu0 %832  ;;  %v1792_v54 = vpop.eup %1314  ;;  %v912_v57 = vsel %vm791_vm1, %v1787_v51, 0.0 }
 0x7ee   :  { %v853_v47 = vsub.f32 %v1744_v50, %v833_v48  ;;  %907 = vadd.xlane.f32.xlu1 %v906_v49  ;;  %898 = vadd.xlane.f32.xlu0 %v897_v46  ;;  %1324 = vpow2.f32 %v884_v44  ;;  %v903_v50 = vsel %vm791_vm1, %v1792_v54, 0.0 }
 0x7ef   :  { %1326 = vpow2.f32 %v878_v45 }
 0x7f0   :  { %v882_v55 = vmul.f32 1.442695, %v853_v47  ;;  %v1796_v58 = vpop.eup %1316 }
 0x7f1   :  { %v839_v56 = vpop.xlane.xlu0 %838  ;;  %v1801_v61 = vpop.eup %1318  ;;  %v918_v63 = vsel %vm791_vm1, %v1796_v58, 0.0 }
 0x7f2   :  { %v855_v59 = vsub.f32 %v1750_v52, %v839_v56  ;;  %913 = vadd.xlane.f32.xlu1 %v912_v57  ;;  %904 = vadd.xlane.f32.xlu0 %v903_v50  ;;  %1328 = vpow2.f32 %v882_v55  ;;  %v909_v2 = vsel %vm791_vm1, %v1801_v61, 0.0 }
 0x7f4   :  { %v886_v62 = vmul.f32 1.442695, %v855_v59  ;;  %v1805_v1 = vpop.eup %1320 }
 0x7f5   :  { %v1809_v0 = vpop.eup %1322  ;;  %v924_v52 = vsel %vm791_vm1, %v1805_v1, 0.0 }
 0x7f6   :  { %919 = vadd.xlane.f32.xlu1 %v918_v63  ;;  %910 = vadd.xlane.f32.xlu0 %v909_v2  ;;  %1330 = vpow2.f32 %v886_v62  ;;  %v915_v8 = vsel %vm791_vm1, %v1809_v0, 0.0 }
 0x7f8   :  { %v1813_v7 = vpop.eup %1324 }
 0x7f9   :  { %v1817_v3 = vpop.eup %1326  ;;  %v930_v4 = vsel %vm791_vm1, %v1813_v7, 0.0 }
 0x7fa   :  { %925 = vadd.xlane.f32.xlu1 %v924_v52  ;;  %916 = vadd.xlane.f32.xlu0 %v915_v8  ;;  %v921_v9 = vsel %vm791_vm1, %v1817_v3, 0.0 }
 0x7fc   :  { %v1823_v12 = vpop.eup %1328 }
 0x7fd   :  { %v927_v11 = vsel %vm791_vm1, %v1823_v12, 0.0 }
 0x7fe   :  { %931 = vadd.xlane.f32.xlu1 %v930_v4  ;;  %922 = vadd.xlane.f32.xlu0 %v921_v9 }
 0x800   :  { %v1827_v10 = vpop.eup %1330 }
 0x801   :  { %v933_v14 = vsel %vm791_vm1, %v1827_v10, 0.0 }
 0x802   :  { %928 = vadd.xlane.f32.xlu0 %v927_v11 }
 0x806   :  { %934 = vadd.xlane.f32.xlu0 %v933_v14 }
 0x86f   :  { %v890_v15 = vpop.xlane.xlu1 %889 }
 0x873   :  { %v896_v16 = vpop.xlane.xlu1 %895 }
 0x874   :  { %1332 = vrcp.f32 %v896_v16 }
 0x877   :  { %v902_v13 = vpop.xlane.xlu1 %901  ;;  %v893_v18 = vpop.xlane.xlu0 %892 }
 0x878   :  { %1334 = vrcp.f32 %v893_v18 }
 0x87b   :  { %v908_v19 = vpop.xlane.xlu1 %907  ;;  %v899_v20 = vpop.xlane.xlu0 %898 }
 0x87c   :  { %1336 = vrcp.f32 %v899_v20 }
 0x87d   :  { %1338 = vrcp.f32 %v890_v15 }
 0x87e   :  { %1340 = vrcp.f32 %v908_v19  ;;  %v1333_v26 = vpop.eup %1332 }
 0x87f   :  { %v914_v21 = vpop.xlane.xlu1 %913  ;;  %v905_v22 = vpop.xlane.xlu0 %904  ;;  %1342 = vrcp.f32 %v902_v13  ;;  %v954_v5 = vmul.f32 %v1333_v26, %v1765_v24 }
 0x880   :  { %1344 = vrcp.f32 %v905_v22 }
 0x882   :  { %v1335_v27 = vpop.eup %1334 }
 0x883   :  { %v920_v23 = vpop.xlane.xlu1 %919  ;;  %v911_v25 = vpop.xlane.xlu0 %910  ;;  %v953_v37 = vmul.f32 %v1335_v27, %v1773_v35 }
 0x884   :  { %1346 = vrcp.f32 %v911_v25 }
 0x885   :  { %1348 = vrcp.f32 %v920_v23 }
 0x886   :  { %v1337_v28 = vpop.eup %1336 }
 0x887   :  { %v926_v29 = vpop.xlane.xlu1 %925  ;;  %v1339_v31 = vpop.eup %1338  ;;  %v955_v32 = vmul.f32 %v1337_v28, %v1783_v43 }
 0x888   :  { %v917_v33 = vpop.xlane.xlu0 %916  ;;  %v1341_v36 = vpop.eup %1340  ;;  %v952_v40 = vmul.f32 %v1339_v31, %v1759_v17 }
 0x889   :  { %v1343_v38 = vpop.eup %1342  ;;  %v958_v41 = vmul.f32 %v1341_v36, %v1777_v39  ;;  %1350 = vrcp.f32 %v917_v33  ;;  %v976_v45 = vcombine.low %v953_v37, %v955_v32 }
 0x88a   :  { %v1345_v48 = vpop.eup %1344  ;;  %v956_v43 = vmul.f32 %v1343_v38, %v1769_v30  ;;  %v968_v49 = vcombine.low %v952_v40, %v954_v5 }
 0x88b   :  { %v932_v44 = vpop.xlane.xlu1 %931  ;;  %v957_v24 = vmul.f32 %v1345_v48, %v1792_v54  ;;  %v983_v17 = vrot.slane %v976_v45, %v1664_v53 }
 0x88c   :  { %v923_v42 = vpop.xlane.xlu0 %922  ;;  %v984_v39 = vcombine.low %v956_v43, %v958_v41  ;;  %v975_v55 = vrot.slane %v968_v49, %v1664_v53 }
 0x88d   :  { %1352 = vrcp.f32 %v923_v42 }
 0x88e   :  { %1354 = vrcp.f32 %v914_v21  ;;  %v1347_v47 = vpop.eup %1346  ;;  %v991_v30 = vrot.slane %v984_v39, %v1664_v53  ;;  %v1000_v50 = vcombine.low %v975_v55, %v983_v17  ;;  %v1001_v11 = vcombine.high %v975_v55, %v983_v17 }
 0x88f   :  { %1356 = vrcp.f32 %v932_v44  ;;  %v959_v35 = vmul.f32 %v1347_v47, %v1801_v61  ;;  %v1349_v62 = vpop.eup %1348 }
 0x890   :  { %v929_v46 = vpop.xlane.xlu0 %928  ;;  %1358 = vrcp.f32 %v926_v29  ;;  %v1008_v4 = vrot.slane %v1000_v50, %v1667_v60  ;;  %v962_v15 = vmul.f32 %v1349_v62, %v1796_v58 }
 0x891   :  { %v992_v56 = vcombine.low %v957_v24, %v959_v35  ;;  %1360 = vrcp.f32 %v929_v46 }
 0x893   :  { %v999_v59 = vrot.slane %v992_v56, %v1664_v53  ;;  %v1351_v54 = vpop.eup %1350 }
 0x894   :  { %v935_v57 = vpop.xlane.xlu0 %934  ;;  %v961_v16 = vmul.f32 %v1351_v54, %v1809_v0 }
 0x895   :  { %1362 = vrcp.f32 %v935_v57  ;;  %v1016_v63 = vcombine.low %v991_v30, %v999_v59  ;;  %v1017_v61 = vcombine.high %v991_v30, %v999_v59 }
 0x897   :  { %v1353_v2 = vpop.eup %1352  ;;  %v1024_v9 = vrot.slane %v1016_v63, %v1667_v60  ;;  %v1031_v18 = vrot.slane %v1017_v61, %v1667_v60 }
 0x898   :  { %v1355_v52 = vpop.eup %1354  ;;  %v963_v8 = vmul.f32 %v1353_v2, %v1817_v3  ;;  %v1015_v3 = vrot.slane %v1001_v11, %v1667_v60 }
 0x899   :  { %v1357_v14 = vpop.eup %1356  ;;  %v1033_v13 = vcombine.high %v1008_v4, %v1024_v9  ;;  %v1032_v20 = vcombine.low %v1008_v4, %v1024_v9  ;;  %v960_v21 = vmul.f32 %v1355_v52, %v1787_v51 }
 0x89a   :  { %v1359_v19 = vpop.eup %1358  ;;  %v966_v22 = vmul.f32 %v1357_v14, %v1813_v7  ;;  %v1044_v23 = vcombine.low %v961_v16, %v963_v8  ;;  %v1034_v26 = vcombine.low %v1015_v3, %v1031_v18 }
 0x89b   :  { %1106 = vrot.lane.b32.xlu1 %v1033_v13, %s1425_s11  ;;  %v1361_v25 = vpop.eup %1360  ;;  %v964_v58 = vmul.f32 %v1359_v19, %v1805_v1  ;;  %v1036_v0 = vcombine.low %v960_v21, %v962_v15 }
 0x89c   :  { %v965_v28 = vmul.f32 %v1361_v25, %v1823_v12  ;;  %v1051_v51 = vrot.slane %v1044_v23, %v1664_v53 }
 0x89d   :  { %v1052_v7 = vcombine.low %v964_v58, %v966_v22  ;;  %v1043_v31 = vrot.slane %v1036_v0, %v1664_v53 }
 0x89f   :  { %v1363_v27 = vpop.eup %1362  ;;  %1114 = vrot.lane.b32.xlu1 %v1034_v26, %s1426_s28  ;;  %v1059_v33 = vrot.slane %v1052_v7, %v1664_v53  ;;  %v1069_v1 = vcombine.high %v1043_v31, %v1051_v51  ;;  %v1068_v5 = vcombine.low %v1043_v31, %v1051_v51 }
 0x8a0   :  { %v967_v29 = vmul.f32 %v1363_v27, %v1827_v10 }
 0x8a1   :  { %v1083_v12 = vrot.slane %v1069_v1, %v1667_v60  ;;  %v1076_v40 = vrot.slane %v1068_v5, %v1667_v60 }
 0x8a2   :  { %v1060_v32 = vcombine.low %v965_v28, %v967_v29 }
 0x8a4   :  { %v1067_v36 = vrot.slane %v1060_v32, %v1664_v53  ;;  %v1035_v53 = vcombine.high %v1015_v3, %v1031_v18 }
 0x8a6   :  { %v1085_v37 = vcombine.high %v1059_v33, %v1067_v36  ;;  %v1084_v38 = vcombine.low %v1059_v33, %v1067_v36 }
 0x8a8   :  { %v1099_v10 = vrot.slane %v1085_v37, %v1667_v60  ;;  %v1092_v41 = vrot.slane %v1084_v38, %v1667_v60 }
 0x8aa   :  { %v1102_v42 = vcombine.low %v1083_v12, %v1099_v10  ;;  %v1101_v44 = vcombine.high %v1076_v40, %v1092_v41  ;;  %v1100_v45 = vcombine.low %v1076_v40, %v1092_v41  ;;  %v1103_v48 = vcombine.high %v1083_v12, %v1099_v10 }
 0x8ac   :  { %1116 = vrot.lane.b32.xlu1 %v1102_v42, %s1426_s28  ;;  %1108 = vrot.lane.b32.xlu0 %v1101_v44, %s1425_s11 }
 0x8b0   :  { %1124 = vrot.lane.b32.xlu1 %v1103_v48, %s1427_s2  ;;  %1122 = vrot.lane.b32.xlu0 %v1035_v53, %s1427_s2 }
 0x90d   :  { %v1107_v43 = vpop.permute.xlu1 %1106 }
 0x90e   :  { %v1129_v60 = vsel %vm1128_vm7, %v1032_v20, %v1107_v43 }
 0x911   :  { %v1115_v49 = vpop.permute.xlu1 %1114 }
 0x912   :  { %v1132_v46 = vsel %vm1131_vm8, %v1129_v60, %v1115_v49 }
 0x91e   :  { %v1109_v47 = vpop.permute.xlu0 %1108  ;;  %v1117_v24 = vpop.permute.xlu1 %1116 }
 0x91f   :  { %v1130_v35 = vsel %vm1128_vm7, %v1100_v45, %v1109_v47 }
 0x920   :  { %v1133_v17 = vsel %vm1131_vm8, %v1130_v35, %v1117_v24 }
 0x922   :  { %v1123_v39 = vpop.permute.xlu0 %1122  ;;  %v1125_v55 = vpop.permute.xlu1 %1124 }
 0x923   :  { %v1135_v56 = vsel %vm1134_vm9, %v1132_v46, %v1123_v39  ;;  %v1136_v57 = vsel %vm1134_vm9, %v1133_v17, %v1125_v55 }
 0x924   :  { %1139 = vrot.lane.b32.xlu0 %v1135_v56, %s1413_s18  ;;  %1141 = vrot.lane.b32.xlu1 %v1136_v57, %s1413_s18 }
 0x996   :  { %v1140_v30 = vpop.permute.xlu0 %1139  ;;  %v1142_v59 = vpop.permute.xlu1 %1141 }
 0x997   :  { %v1146_v50 = vsel %vm1145_vm10, %v1643_v34, %v1140_v30  ;;  %v1147_v62 = vsel %vm1145_vm10, %v1648_v6, %v1142_v59 }
 0x998   :  { %v1149_v54 = vsel %vm1148_vm11, %v1146_v50, %v1643_v34  ;;  %v1150_v63 = vsel %vm1148_vm11, %v1147_v62, %v1648_v6 }
 0x999   :  { %1151 = vst [vmem:[%s1890_s13] sm:$0xff] %v1149_v54  ;;  %1152 = vst [vmem:[%s1890_s13 + $0x8] sm:$0xff] %v1150_v63 }
 0x99a   :  { %1161 = vsyncpa [#allocation3], 1 }
 0x99b   :  { %1162 = vsyncpa [#allocation5], 1 }

// kernel: decoder_layer_forward.4
= control target key start
LH: loop header
LB: loop body
LE: loop exit
PB: predicated region body
PF: predicated region fallthrough
CT: control target
= control target key end

     0   :  { %s1093_s12 = smov 0   ;;  %s1095_s13 = smov 0   ;;  %s1255_s0 = inlined_call_operand.vmem [shape: f32[2,32,256], index: 0, kind: input, shape index: {}]   ;;  %s1256_s1 = inlined_call_operand.vmem [shape: bf16[32,32], index: 1, kind: input, shape index: {}]   ;;  %s1257_s2 = inlined_call_operand.vmem [shape: f32[1,32], index: 2, kind: input, shape index: {}]   ;;  %s1258_s3 = inlined_call_operand.vmem [shape: bf16[2,256,32], index: 3, kind: output, shape index: {}]  }
   0x1   :  { %s1097_s14 = smov 0  }
   0x2 LB: > { %s25_s15 = sadd.s32 1, %s1067_s13  ;;  %p784_p0 = scmp.ge.s32.totalorder %s1071_s14, 1  ;;  %s1071_s14 = sphi %s1097_s14, %s13_s14   ;;  %s1067_s13 = sphi %s1095_s13, %s1260_s13   ;;  %s1063_s12 = sphi %s1093_s12, %s1259_s12  }
   0x3   : > { %p27_p1 = scmp.ge.s32.totalorder %s25_s15, 2  ;;  %p158_p2 = scmp.lt.s32.totalorder %s1071_s14, 3 }
   0x5   : > { %s1262_s15 = smov (%p27_p1, %s25_s15), 0  ;;  %p159_p3 = pnand %p784_p0, %p158_p2 }
   0x6   : > { %p191_p4 = scmp.lt.s32.totalorder (!%p159_p3), %s1063_s12, 1  ;;  %v1047_v11 = vld [vmem:[%s1256_s1] sm:$0xff] (!%p159_p3)   ;;  %v1048_v13 = vld [vmem:[%s1256_s1 + $0x8] sm:$0xff] (!%p159_p3)   ;;  %vm322_vm0 = vcmask (!%p159_p3), 261120   ;;  %vm660_vm1 = vcmask (!%p159_p3), 257024  }
   0x7   : > { %162 = sbr.rel (%p159_p3) target bundleno = 433 (0x1b1), region = 32  ;;  %894 = vmatprep.subr.bf16.mxu0 (!%p159_p3), %v1047_v11  ;;  %930 = vmatprep.subr.bf16.mxu1 (!%p159_p3), %v1047_v11 }
   0x8   : > { %895 = vmatpush3.bf16.msra.mxu0 (!%p159_p3), %v1047_v11  ;;  %932 = vmatpush3.bf16.msra.mxu1 (!%p159_p3), %v1047_v11 }
   0x9   : > { %896 = vmatprep.subr.bf16.mxu0 (!%p159_p3), %v1048_v13  ;;  %931 = vmatprep.subr.bf16.mxu1 (!%p159_p3), %v1048_v13 }
   0xc   : > { %897 = vmatpush3.bf16.msra.mxu0 (!%p159_p3), %v1048_v13  ;;  %933 = vmatpush3.bf16.msra.mxu1 (!%p159_p3), %v1048_v13 }
   0xe   : > { %s1264_s12 = smov (!%p191_p4, %s1063_s12), 1 }
   0xf   : > { %s842_s16 = sshll.u32 %s1264_s12, 6  ;;  %s843_s26 = sshll.u32 %s1264_s12, 7 }
  0x10   : > { %s198_s19 = scalar_lea.vmem %s1255_s0, %s842_s16  ;;  %s1150_s29 = scalar_lea.vmem %s1258_s3, %s843_s26 }
  0x11   : > { %v211_v0 = vld [vmem:[%s198_s19] sm:$0xff]  ;;  %v212_v1 = vld [vmem:[%s198_s19 + $0x8] sm:$0xff]  ;;  %v213_v2 = vld [vmem:[%s198_s19 + $0x10] sm:$0xff] }
  0x12   : > { %v959_v3 = vpack.i.bf16 %v212_v1, %v211_v0  ;;  %v214_v4 = vld [vmem:[%s198_s19 + $0x18] sm:$0xff]  ;;  %v215_v6 = vld [vmem:[%s198_s19 + $0x20] sm:$0xff]  ;;  %v216_v7 = vld [vmem:[%s198_s19 + $0x28] sm:$0xff] }
  0x13   : > { %v961_v5 = vpack.i.bf16 %v214_v4, %v213_v2  ;;  %v963_v8 = vpack.i.bf16 %v216_v7, %v215_v6  ;;  %v217_v9 = vld [vmem:[%s198_s19 + $0x30] sm:$0xff]  ;;  %v218_v10 = vld [vmem:[%s198_s19 + $0x38] sm:$0xff] }
  0x14   : > { %960 = vxpose.xlu0.b32.start [1/4] (short) %v959_v3, 128  ;;  %v965_v12 = vpack.i.bf16 %v218_v10, %v217_v9 }
  0x18   : > { %962 = vxpose.xlu0.b32.cont [2/4] (short) %v961_v5, 128 }
  0x1c   : > { %964 = vxpose.xlu0.b32.cont [3/4] (short) %v963_v8, 128 }
  0x20   : > { %966 = vxpose.xlu0.b32.end [4/4] (short) %v965_v12, 128 }
  0x94   : > { %v967_v14 = vpop.trf.xlu0 }
  0x95   : > { %v968_v16 = vunpack.i.l.bf16 %v967_v14  ;;  %v971_v17 = vunpack.i.h.bf16 %v967_v14  ;;  %v1142_v14 = vld [vmem:[%s1257_s2] ss:$0 sm:$0xff] }
  0x98   : > { %v972_v15 = vpop.trf.xlu0 }
  0x99   : > { %v973_v18 = vunpack.i.l.bf16 %v972_v15  ;;  %v976_v19 = vunpack.i.h.bf16 %v972_v15 }
  0x9b   : > { %v283_v20 = vpack.c.bf16 %v973_v18, %v968_v16  ;;  %v291_v21 = vpack.c.bf16 %v976_v19, %v971_v17 }
  0x9c   : > { %v977_v22 = vpop.trf.xlu0 }
  0x9d   : > { %898 = vmatprep.mubr.msk.bf16.mxu0 %vm322_vm0, %v283_v20  ;;  %914 = vmatprep.mubr.msk.bf16.mxu1 %vm322_vm0, %v291_v21  ;;  %v981_v23 = vunpack.i.h.bf16 %v977_v22  ;;  %v978_v24 = vunpack.i.l.bf16 %v977_v22 }
  0xa0   : > { %v982_v25 = vpop.trf.xlu0 }
  0xa1   : > { %v986_v26 = vunpack.i.h.bf16 %v982_v25  ;;  %v983_v27 = vunpack.i.l.bf16 %v982_v25 }
  0xa3   : > { %v284_v28 = vpack.c.bf16 %v983_v27, %v978_v24  ;;  %v292_v29 = vpack.c.bf16 %v986_v26, %v981_v23 }
  0xa4   : > { %v987_v30 = vpop.trf.xlu0 }
  0xa5   : > { %899 = vmatmul.mubr.msk.bf16.vlgmr.msra.gmra.mrb[0].mxu0 %vm322_vm0, %v284_v28  ;;  %915 = vmatmul.mubr.msk.bf16.vlgmr.msra.gmra.mrb[0].mxu1 %vm322_vm0, %v292_v29  ;;  %v991_v31 = vunpack.i.h.bf16 %v987_v30  ;;  %v988_v32 = vunpack.i.l.bf16 %v987_v30 }
  0xa8   : > { %v992_v33 = vpop.trf.xlu0 }
  0xa9   : > { %v996_v34 = vunpack.i.h.bf16 %v992_v33  ;;  %v993_v35 = vunpack.i.l.bf16 %v992_v33 }
  0xab   : > { %v285_v36 = vpack.c.bf16 %v993_v35, %v988_v32  ;;  %v293_v37 = vpack.c.bf16 %v996_v34, %v991_v31 }
  0xac   : > { %v997_v38 = vpop.trf.xlu0 }
  0xad   : > { %902 = vmatprep.mubr.msk.bf16.mxu0 %vm322_vm0, %v285_v36  ;;  %918 = vmatprep.mubr.msk.bf16.mxu1 %vm322_vm0, %v293_v37  ;;  %v1001_v39 = vunpack.i.h.bf16 %v997_v38  ;;  %v998_v40 = vunpack.i.l.bf16 %v997_v38 }
  0xb0   : > { %v1002_v41 = vpop.trf.xlu0 }
  0xb1   : > { %v1006_v42 = vunpack.i.h.bf16 %v1002_v41  ;;  %v1003_v43 = vunpack.i.l.bf16 %v1002_v41 }
  0xb3   : > { %v286_v44 = vpack.c.bf16 %v1003_v43, %v998_v40  ;;  %v294_v45 = vpack.c.bf16 %v1006_v42, %v1001_v39 }
  0xb4   : > { %v1007_v46 = vpop.trf.xlu0 }
  0xb5   : > { %903 = vmatmul.mubr.msk.bf16.gmra.mrb[4].mxu0 %vm322_vm0, %v286_v44  ;;  %919 = vmatmul.mubr.msk.bf16.gmra.mrb[4].mxu1 %vm322_vm0, %v294_v45  ;;  %v1011_v47 = vunpack.i.h.bf16 %v1007_v46  ;;  %v1008_v48 = vunpack.i.l.bf16 %v1007_v46 }
  0xb8   : > { %v1012_v49 = vpop.trf.xlu0 }
  0xb9   : > { %v1016_v50 = vunpack.i.h.bf16 %v1012_v49  ;;  %v1013_v51 = vunpack.i.l.bf16 %v1012_v49 }
  0xbb   : > { %v287_v52 = vpack.c.bf16 %v1013_v51, %v1008_v48  ;;  %v295_v53 = vpack.c.bf16 %v1016_v50, %v1011_v47 }
  0xbc   : > { %v1017_v54 = vpop.trf.xlu0 }
  0xbd   : > { %906 = vmatprep.mubr.msk.bf16.mxu0 %vm322_vm0, %v287_v52  ;;  %922 = vmatprep.mubr.msk.bf16.mxu1 %vm322_vm0, %v295_v53  ;;  %v1021_v55 = vunpack.i.h.bf16 %v1017_v54  ;;  %v1018_v56 = vunpack.i.l.bf16 %v1017_v54 }
  0xc0   : > { %v1022_v57 = vpop.trf.xlu0 }
  0xc1   : > { %v1026_v58 = vunpack.i.h.bf16 %v1022_v57  ;;  %v1023_v59 = vunpack.i.l.bf16 %v1022_v57 }
  0xc3   : > { %v288_v60 = vpack.c.bf16 %v1023_v59, %v1018_v56  ;;  %v296_v61 = vpack.c.bf16 %v1026_v58, %v1021_v55 }
  0xc4   : > { %v1027_v62 = vpop.trf.xlu0 }
  0xc5   : > { %907 = vmatmul.mubr.msk.bf16.gmra.mrb[8].mxu0 %vm322_vm0, %v288_v60  ;;  %923 = vmatmul.mubr.msk.bf16.gmra.mrb[8].mxu1 %vm322_vm0, %v296_v61  ;;  %v1031_v63 = vunpack.i.h.bf16 %v1027_v62  ;;  %v1028_v0 = vunpack.i.l.bf16 %v1027_v62 }
  0xc8   : > { %v1032_v1 = vpop.trf.xlu0 }
  0xc9   : > { %v1036_v2 = vunpack.i.h.bf16 %v1032_v1  ;;  %v1033_v3 = vunpack.i.l.bf16 %v1032_v1 }
  0xcb   : > { %v289_v4 = vpack.c.bf16 %v1033_v3, %v1028_v0  ;;  %v297_v5 = vpack.c.bf16 %v1036_v2, %v1031_v63 }
  0xcc   : > { %v1037_v6 = vpop.trf.xlu0 }
  0xcd   : > { %910 = vmatprep.mubr.msk.bf16.mxu0 %vm322_vm0, %v289_v4  ;;  %926 = vmatprep.mubr.msk.bf16.mxu1 %vm322_vm0, %v297_v5  ;;  %v1041_v7 = vunpack.i.h.bf16 %v1037_v6  ;;  %v1038_v8 = vunpack.i.l.bf16 %v1037_v6 }
  0xd0   : > { %v1042_v9 = vpop.trf.xlu0 }
  0xd1   : > { %v1046_v10 = vunpack.i.h.bf16 %v1042_v9  ;;  %v1043_v11 = vunpack.i.l.bf16 %v1042_v9 }
  0xd3   : > { %v290_v12 = vpack.c.bf16 %v1043_v11, %v1038_v8  ;;  %v298_v13 = vpack.c.bf16 %v1046_v10, %v1041_v7 }
  0xd5   : > { %911 = vmatmul.mubr.msk.bf16.gmra.mrb[12].mxu0 %vm322_vm0, %v290_v12  ;;  %927 = vmatmul.mubr.msk.bf16.gmra.mrb[12].mxu1 %vm322_vm0, %v298_v13 }
 0x178   : > { %v900_v15 = vpop.f32.mrb[0].mxu0  ;;  %v916_v16 = vpop.f32.mrb[0].mxu1 }
 0x179   : > { %v414_v17 = vadd.f32 %v900_v15, %v1142_v14  ;;  %v478_v18 = vadd.f32 %v916_v16, %v1142_v14  ;;  %v405_v19 = vpop.f32.mrb[1].mxu0  ;;  %v469_v20 = vpop.f32.mrb[1].mxu1 }
 0x17a   : > { %v406_v21 = vadd.f32 %v1142_v14, %v405_v19  ;;  %v470_v22 = vadd.f32 %v1142_v14, %v469_v20  ;;  %v901_v23 = vpop.f32.mrb[2].mxu0  ;;  %v917_v24 = vpop.f32.mrb[2].mxu1 }
 0x17b   : > { %v846_v25 = vpack.c.bf16 %v414_v17, %v414_v17  ;;  %v862_v26 = vpack.c.bf16 %v478_v18, %v478_v18  ;;  %v417_v27 = vadd.f32 %v901_v23, %v1142_v14  ;;  %v481_v28 = vadd.f32 %v917_v24, %v1142_v14  ;;  %v408_v29 = vpop.f32.mrb[3].mxu0  ;;  %v472_v30 = vpop.f32.mrb[3].mxu1 }
 0x17c   : > { %v844_v31 = vpack.c.bf16 %v406_v21, %v406_v21  ;;  %v860_v32 = vpack.c.bf16 %v470_v22, %v470_v22  ;;  %v409_v33 = vadd.f32 %v1142_v14, %v408_v29  ;;  %v473_v34 = vadd.f32 %v1142_v14, %v472_v30 }
 0x17d   : > { %663 = vst.msk [vmem:[%s1150_s29 + $0x8] sm:$0xf] %vm660_vm1, %v846_v25  ;;  %679 = vst.msk [vmem:[%s1150_s29 + $0x48] sm:$0xf] %vm660_vm1, %v862_v26  ;;  %v847_v35 = vpack.c.bf16 %v417_v27, %v417_v27  ;;  %v863_v36 = vpack.c.bf16 %v481_v28, %v481_v28 }
 0x17e   : > { %661 = vst.msk [vmem:[%s1150_s29] sm:$0xf] %vm660_vm1, %v844_v31  ;;  %677 = vst.msk [vmem:[%s1150_s29 + $0x40] sm:$0xf] %vm660_vm1, %v860_v32  ;;  %v845_v37 = vpack.c.bf16 %v409_v33, %v409_v33  ;;  %v861_v38 = vpack.c.bf16 %v473_v34, %v473_v34 }
 0x17f   : > { %664 = vst.msk [vmem:[%s1150_s29 + $0xc] sm:$0xf] %vm660_vm1, %v847_v35  ;;  %680 = vst.msk [vmem:[%s1150_s29 + $0x4c] sm:$0xf] %vm660_vm1, %v863_v36 }
 0x180   : > { %662 = vst.msk [vmem:[%s1150_s29 + $0x4] sm:$0xf] %vm660_vm1, %v845_v37  ;;  %678 = vst.msk [vmem:[%s1150_s29 + $0x44] sm:$0xf] %vm660_vm1, %v861_v38 }
 0x188   : > { %v904_v39 = vpop.f32.mrb[4].mxu0  ;;  %v920_v40 = vpop.f32.mrb[4].mxu1 }
 0x189   : > { %v430_v41 = vadd.f32 %v904_v39, %v1142_v14  ;;  %v494_v42 = vadd.f32 %v920_v40, %v1142_v14  ;;  %v421_v43 = vpop.f32.mrb[5].mxu0  ;;  %v485_v44 = vpop.f32.mrb[5].mxu1 }
 0x18a   : > { %v422_v45 = vadd.f32 %v1142_v14, %v421_v43  ;;  %v486_v46 = vadd.f32 %v1142_v14, %v485_v44  ;;  %v905_v47 = vpop.f32.mrb[6].mxu0  ;;  %v921_v48 = vpop.f32.mrb[6].mxu1 }
 0x18b   : > { %v850_v49 = vpack.c.bf16 %v430_v41, %v430_v41  ;;  %v866_v50 = vpack.c.bf16 %v494_v42, %v494_v42  ;;  %v433_v51 = vadd.f32 %v905_v47, %v1142_v14  ;;  %v497_v52 = vadd.f32 %v921_v48, %v1142_v14  ;;  %v424_v53 = vpop.f32.mrb[7].mxu0  ;;  %v488_v54 = vpop.f32.mrb[7].mxu1 }
 0x18c   : > { %v848_v55 = vpack.c.bf16 %v422_v45, %v422_v45  ;;  %v864_v56 = vpack.c.bf16 %v486_v46, %v486_v46  ;;  %v425_v57 = vadd.f32 %v1142_v14, %v424_v53  ;;  %v489_v58 = vadd.f32 %v1142_v14, %v488_v54 }
 0x18d   : > { %667 = vst.msk [vmem:[%s1150_s29 + $0x18] sm:$0xf] %vm660_vm1, %v850_v49  ;;  %683 = vst.msk [vmem:[%s1150_s29 + $0x58] sm:$0xf] %vm660_vm1, %v866_v50  ;;  %v851_v59 = vpack.c.bf16 %v433_v51, %v433_v51  ;;  %v867_v60 = vpack.c.bf16 %v497_v52, %v497_v52 }
 0x18e   : > { %665 = vst.msk [vmem:[%s1150_s29 + $0x10] sm:$0xf] %vm660_vm1, %v848_v55  ;;  %681 = vst.msk [vmem:[%s1150_s29 + $0x50] sm:$0xf] %vm660_vm1, %v864_v56  ;;  %v849_v61 = vpack.c.bf16 %v425_v57, %v425_v57  ;;  %v865_v62 = vpack.c.bf16 %v489_v58, %v489_v58 }
 0x18f   : > { %668 = vst.msk [vmem:[%s1150_s29 + $0x1c] sm:$0xf] %vm660_vm1, %v851_v59  ;;  %684 = vst.msk [vmem:[%s1150_s29 + $0x5c] sm:$0xf] %vm660_vm1, %v867_v60 }
 0x190   : > { %666 = vst.msk [vmem:[%s1150_s29 + $0x14] sm:$0xf] %vm660_vm1, %v849_v61  ;;  %682 = vst.msk [vmem:[%s1150_s29 + $0x54] sm:$0xf] %vm660_vm1, %v865_v62 }
 0x198   : > { %v908_v63 = vpop.f32.mrb[8].mxu0  ;;  %v924_v0 = vpop.f32.mrb[8].mxu1 }
 0x199   : > { %v446_v1 = vadd.f32 %v908_v63, %v1142_v14  ;;  %v510_v2 = vadd.f32 %v924_v0, %v1142_v14  ;;  %v437_v3 = vpop.f32.mrb[9].mxu0  ;;  %v501_v4 = vpop.f32.mrb[9].mxu1 }
 0x19a   : > { %v438_v5 = vadd.f32 %v1142_v14, %v437_v3  ;;  %v502_v6 = vadd.f32 %v1142_v14, %v501_v4  ;;  %v909_v7 = vpop.f32.mrb[10].mxu0  ;;  %v925_v8 = vpop.f32.mrb[10].mxu1 }
 0x19b   : > { %v854_v9 = vpack.c.bf16 %v446_v1, %v446_v1  ;;  %v870_v10 = vpack.c.bf16 %v510_v2, %v510_v2  ;;  %v449_v11 = vadd.f32 %v909_v7, %v1142_v14  ;;  %v513_v12 = vadd.f32 %v925_v8, %v1142_v14  ;;  %v440_v13 = vpop.f32.mrb[11].mxu0  ;;  %v504_v15 = vpop.f32.mrb[11].mxu1 }
 0x19c   : > { %v852_v16 = vpack.c.bf16 %v438_v5, %v438_v5  ;;  %v868_v17 = vpack.c.bf16 %v502_v6, %v502_v6  ;;  %v441_v18 = vadd.f32 %v1142_v14, %v440_v13  ;;  %v505_v19 = vadd.f32 %v1142_v14, %v504_v15 }
 0x19d   : > { %671 = vst.msk [vmem:[%s1150_s29 + $0x28] sm:$0xf] %vm660_vm1, %v854_v9  ;;  %687 = vst.msk [vmem:[%s1150_s29 + $0x68] sm:$0xf] %vm660_vm1, %v870_v10  ;;  %v855_v20 = vpack.c.bf16 %v449_v11, %v449_v11  ;;  %v871_v21 = vpack.c.bf16 %v513_v12, %v513_v12 }
 0x19e   : > { %669 = vst.msk [vmem:[%s1150_s29 + $0x20] sm:$0xf] %vm660_vm1, %v852_v16  ;;  %685 = vst.msk [vmem:[%s1150_s29 + $0x60] sm:$0xf] %vm660_vm1, %v868_v17  ;;  %v853_v22 = vpack.c.bf16 %v441_v18, %v441_v18  ;;  %v869_v23 = vpack.c.bf16 %v505_v19, %v505_v19 }
 0x19f   : > { %672 = vst.msk [vmem:[%s1150_s29 + $0x2c] sm:$0xf] %vm660_vm1, %v855_v20  ;;  %688 = vst.msk [vmem:[%s1150_s29 + $0x6c] sm:$0xf] %vm660_vm1, %v871_v21 }
 0x1a0   : > { %670 = vst.msk [vmem:[%s1150_s29 + $0x24] sm:$0xf] %vm660_vm1, %v853_v22  ;;  %686 = vst.msk [vmem:[%s1150_s29 + $0x64] sm:$0xf] %vm660_vm1, %v869_v23 }
 0x1a8   : > { %v912_v24 = vpop.f32.mrb[12].mxu0  ;;  %v928_v25 = vpop.f32.mrb[12].mxu1 }
 0x1a9   : > { %v462_v26 = vadd.f32 %v912_v24, %v1142_v14  ;;  %v526_v27 = vadd.f32 %v928_v25, %v1142_v14  ;;  %v453_v28 = vpop.f32.mrb[13].mxu0  ;;  %v517_v29 = vpop.f32.mrb[13].mxu1 }
 0x1aa   : > { %v454_v30 = vadd.f32 %v1142_v14, %v453_v28  ;;  %v518_v31 = vadd.f32 %v1142_v14, %v517_v29  ;;  %v913_v32 = vpop.f32.mrb[14].mxu0  ;;  %v929_v33 = vpop.f32.mrb[14].mxu1 }
 0x1ab   : > { %v858_v34 = vpack.c.bf16 %v462_v26, %v462_v26  ;;  %v874_v35 = vpack.c.bf16 %v526_v27, %v526_v27  ;;  %v465_v36 = vadd.f32 %v913_v32, %v1142_v14  ;;  %v529_v37 = vadd.f32 %v929_v33, %v1142_v14  ;;  %v456_v38 = vpop.f32.mrb[15].mxu0  ;;  %v520_v39 = vpop.f32.mrb[15].mxu1 }
 0x1ac   : > { %v856_v40 = vpack.c.bf16 %v454_v30, %v454_v30  ;;  %v872_v41 = vpack.c.bf16 %v518_v31, %v518_v31  ;;  %v457_v42 = vadd.f32 %v1142_v14, %v456_v38  ;;  %v521_v43 = vadd.f32 %v1142_v14, %v520_v39 }
 0x1ad   : > { %675 = vst.msk [vmem:[%s1150_s29 + $0x38] sm:$0xf] %vm660_vm1, %v858_v34  ;;  %691 = vst.msk [vmem:[%s1150_s29 + $0x78] sm:$0xf] %vm660_vm1, %v874_v35  ;;  %v859_v44 = vpack.c.bf16 %v465_v36, %v465_v36  ;;  %v875_v45 = vpack.c.bf16 %v529_v37, %v529_v37 }
 0x1ae   : > { %673 = vst.msk [vmem:[%s1150_s29 + $0x30] sm:$0xf] %vm660_vm1, %v856_v40  ;;  %689 = vst.msk [vmem:[%s1150_s29 + $0x70] sm:$0xf] %vm660_vm1, %v872_v41  ;;  %v857_v46 = vpack.c.bf16 %v457_v42, %v457_v42  ;;  %v873_v47 = vpack.c.bf16 %v521_v43, %v521_v43 }
 0x1af   : > { %676 = vst.msk [vmem:[%s1150_s29 + $0x3c] sm:$0xf] %vm660_vm1, %v859_v44  ;;  %692 = vst.msk [vmem:[%s1150_s29 + $0x7c] sm:$0xf] %vm660_vm1, %v875_v45 }
 0x1b0   : > { %674 = vst.msk [vmem:[%s1150_s29 + $0x34] sm:$0xf] %vm660_vm1, %v857_v46  ;;  %690 = vst.msk [vmem:[%s1150_s29 + $0x74] sm:$0xf] %vm660_vm1, %v873_v47 }
 0x1b1 PF: > { %s13_s14 = sadd.s32 1, %s1071_s14   ;;  %s1259_s12 = smov %s1067_s13 }
 0x1b2   : > { %p10_p5 = scmp.ge.s32.totalorder %s13_s14, 4   ;;  %s1260_s13 = smov %s1262_s15 }
 0x1b4   :  { %12 = sbr.rel (!%p10_p5) target bundleno = 2 (0x2), region = 62 }

// kernel: decoder_layer_forward.5
= control target key start
LH: loop header
LB: loop body
LE: loop exit
PB: predicated region body
PF: predicated region fallthrough
CT: control target
= control target key end

     0   :  { %v490_v1 = vmov 0.0   ;;  %vm491_vm0 = vmmov 0   ;;  %vm69_vm1 = vcmask 261120   ;;  %s649_s0 = inlined_call_operand.vmem [shape: f32[16,32], index: 0, kind: input, shape index: {}]   ;;  %s650_s1 = inlined_call_operand.vmem [shape: bf16[16,32], index: 1, kind: input, shape index: {}]   ;;  %s651_s2 = inlined_call_operand.vmem [shape: bf16[32,32], index: 2, kind: input, shape index: {}]   ;;  %s652_s3 = inlined_call_operand.vmem [shape: f32[1,32], index: 3, kind: input, shape index: {}]   ;;  %s653_s4 = inlined_call_operand.vmem [shape: f32[1,32], index: 4, kind: input, shape index: {}]   ;;  %s654_s5 = inlined_call_operand.vmem [shape: f32[1,32], index: 5, kind: input, shape index: {}]   ;;  %s655_s6 = inlined_call_operand.vmem [shape: bf16[32,64], index: 6, kind: input, shape index: {}]   ;;  %s656_s7 = inlined_call_operand.vmem [shape: f32[1,64], index: 7, kind: input, shape index: {}]   ;;  %s657_s8 = inlined_call_operand.vmem [shape: bf16[64,32], index: 8, kind: input, shape index: {}]   ;;  %s658_s9 = inlined_call_operand.vmem [shape: f32[1,32], index: 9, kind: input, shape index: {}]   ;;  %s659_s10 = inlined_call_operand.vmem [shape: f32[1,32], index: 10, kind: input, shape index: {}]   ;;  %s660_s11 = inlined_call_operand.vmem [shape: f32[1,32], index: 11, kind: input, shape index: {}]   ;;  %s661_s12 = inlined_call_operand.hbm [shape: f32[16,32], index: 12, kind: output, shape index: {}]  }
   0x1   :  { %v450_v0 = vld [vmem:[%s651_s2] sm:$0xff]   ;;  %417 = vmatprep.subr.bf16.mxu1 %v490_v1  ;;  %433 = vmatprep.subr.bf16.mxu0 %v490_v1  ;;  %v451_v2 = vld [vmem:[%s651_s2 + $0x8] sm:$0xff]  }
   0x2   :  { %418 = vmatpush3.bf16.msra.mxu1 %v450_v0  ;;  %421 = vmatprep.mubr.msk.bf16.mxu1 %vm491_vm0, %v490_v1  ;;  %v43_v3 = vld [vmem:[%s649_s0] sm:$0xff]  ;;  %v44_v4 = vld [vmem:[%s649_s0 + $0x8] sm:$0xff] }
   0x3   :  { %419 = vmatprep.subr.bf16.mxu1 %v490_v1  ;;  %441 = vmatprep.mubr.msk.bf16.mxu0 %vm491_vm0, %v490_v1  ;;  %v45_v5 = vpack.c.bf16 %v44_v4, %v43_v3 }
   0x6   :  { %420 = vmatpush3.bf16.msra.mxu1 %v451_v2 }
   0x7   :  { %425 = vmatprep.subr.bf16.mxu1 %v490_v1 }
   0x8   :  { %17 = vsyncpa [#allocation3], 0  ;;  %v403_v6 = vld [vmem:[%s650_s1] sm:$0xff]   ;;  %v453_v31 = vld [vmem:[%s655_s6 + $0x8] sm:$0xff]   ;;  %vm275_vm2 = vcmask 523264   ;;  %s492_s2 = smov [#allocation2]  }
   0x9   :  { %422 = vmatmul.mubr.msk.bf16.vlgmr.msra.gmra.mrb[0].mxu1 %vm69_vm1, %v45_v5  ;;  %v384_v7 = vld [vmem:[%s652_s3] ss:$0 sm:$0xff]  ;;  %v404_v8 = vunpack.c.l.bf16 %v403_v6  ;;  %v405_v12 = vunpack.c.h.bf16 %v403_v6  ;;  %v455_v33 = vld [vmem:[%s657_s8 + $0x8] sm:$0xff]   ;;  %v456_v51 = vld [vmem:[%s657_s8 + $0x10] sm:$0xff]   ;;  %s373_s29 = sshll.u32 %s492_s2, 4  ;;  %s374_s29 = int_to_ptr.vmem [resolvable:$true] %s373_s29 }
   0xa   :  { %429 = vmatprep.mubr.msk.bf16.mxu1 %vm491_vm0, %v490_v1  ;;  %v452_v30 = vld [vmem:[%s655_s6] sm:$0xff]   ;;  %v457_v52 = vld [vmem:[%s657_s8 + $0x18] sm:$0xff]   ;;  %s466_s30 = scalar_lea.vmem %s374_s29, 256  ;;  %p471_p1 = scmp.lt.s32.totalorder %s374_s29, %s374_s29 }
   0xb   :  { %426 = vmatpush3.bf16.msra.mxu1 %v452_v30  ;;  %v454_v32 = vld [vmem:[%s657_s8] sm:$0xff]   ;;  %p467_p0 = scmp.ne.s32.totalorder %s374_s29, %s466_s30  ;;  %p472_p2 = scmp.lt.s32.totalorder %s466_s30, %s466_s30 }
   0xc   :  { %427 = vmatprep.subr.bf16.mxu1 %v490_v1  ;;  %434 = vmatpush3.bf16.msra.mxu0 %v454_v32  ;;  %v388_v42 = vld [vmem:[%s653_s4] ss:$0 sm:$0xff] }
   0xd   :  { %435 = vmatprep.subr.bf16.mxu0 %v490_v1  ;;  %v389_v46 = vld [vmem:[%s654_s5] ss:$0 sm:$0xff]  ;;  %p473_p3 = por %p472_p2, %p471_p1 }
   0xe   :  { %v390_v53 = vld [vmem:[%s656_s7] ss:$0 sm:$0xff] }
   0xf   :  { %428 = vmatpush3.bf16.msra.mxu1 %v453_v31  ;;  %v394_v63 = vld [vmem:[%s658_s9] ss:$0 sm:$0xff]  ;;  %p474_p4 = pnand %p473_p3, %p467_p0 }
  0x10   :  { %436 = vmatpush3.bf16.msra.mxu0 %v455_v33  ;;  %v401_v30 = vld [vmem:[%s660_s11] ss:$0 sm:$0xff] }
  0x11   :  { %437 = vmatprep.subr.bf16.mxu0 %v490_v1 }
  0x14   :  { %438 = vmatpush3.bf16.msra.mxu0 %v456_v51 }
  0x15   :  { %439 = vmatprep.subr.bf16.mxu0 %v490_v1 }
  0x18   :  { %440 = vmatpush3.bf16.msra.mxu0 %v457_v52 }
  0xdc   :  { %v107_v9 = vpop.f32.mrb[0].mxu1 }
  0xdd   :  { %v108_v10 = vadd.f32 %v384_v7, %v107_v9  ;;  %v423_v11 = vpop.f32.mrb[1].mxu1 }
  0xde   :  { %v110_v13 = vpop.f32.mrb[2].mxu1 }
  0xdf   :  { %v111_v14 = vadd.f32 %v384_v7, %v110_v13  ;;  %v424_v15 = vpop.f32.mrb[3].mxu1  ;;  %v118_v16 = vadd.f32 %v404_v8, %v108_v10 }
  0xe1   :  { %v120_v17 = vsel %vm69_vm1, %v118_v16, 0.0  ;;  %v119_v18 = vadd.f32 %v405_v12, %v111_v14 }
  0xe2   :  { %121 = vadd.xlane.f32.xlu0 %v120_v17 }
  0xe3   :  { %v123_v19 = vsel %vm69_vm1, %v119_v18, 0.0 }
  0xe6   :  { %124 = vadd.xlane.f32.xlu0 %v123_v19 }
 0x16f   :  { %v122_v20 = vpop.xlane.xlu0 %121 }
 0x170   :  { %v127_v21 = vmul.f32 0.03125, %v122_v20 }
 0x172   :  { %v129_v22 = vsub.f32 %v118_v16, %v127_v21 }
 0x173   :  { %v125_v23 = vpop.xlane.xlu0 %124 }
 0x174   :  { %v128_v24 = vmul.f32 0.03125, %v125_v23  ;;  %v131_v25 = vmul.f32 %v129_v22, %v129_v22 }
 0x176   :  { %v130_v26 = vsub.f32 %v119_v18, %v128_v24  ;;  %v133_v27 = vsel %vm69_vm1, %v131_v25, 0.0 }
 0x177   :  { %134 = vadd.xlane.f32.xlu1 %v133_v27  ;;  %v400_v27 = vld [vmem:[%s659_s10] ss:$0 sm:$0xff] }
 0x178   :  { %v132_v28 = vmul.f32 %v130_v26, %v130_v26 }
 0x17a   :  { %v136_v29 = vsel %vm69_vm1, %v132_v28, 0.0 }
 0x17b   :  { %137 = vadd.xlane.f32.xlu1 %v136_v29 }
 0x204   :  { %v135_v34 = vpop.xlane.xlu1 %134 }
 0x205   :  { %v139_v35 = vmul.f32 0.03125, %v135_v34 }
 0x207   :  { %v141_v36 = vadd.f32 1e-05, %v139_v35 }
 0x208   :  { %v138_v37 = vpop.xlane.xlu1 %137 }
 0x209   :  { %458 = vrsqrt.f32 %v141_v36  ;;  %v140_v38 = vmul.f32 0.03125, %v138_v37 }
 0x20b   :  { %v142_v39 = vadd.f32 1e-05, %v140_v38 }
 0x20d   :  { %460 = vrsqrt.f32 %v142_v39 }
 0x213   :  { %v459_v40 = vpop.eup %458 }
 0x214   :  { %v145_v41 = vmul.f32 %v459_v40, %v129_v22 }
 0x216   :  { %v154_v44 = vmul.f32 %v388_v42, %v145_v41 }
 0x217   :  { %v461_v43 = vpop.eup %460 }
 0x218   :  { %v146_v45 = vmul.f32 %v461_v43, %v130_v26  ;;  %v163_v48 = vadd.f32 %v389_v46, %v154_v44 }
 0x21a   :  { %v155_v47 = vmul.f32 %v388_v42, %v146_v45 }
 0x21c   :  { %v164_v49 = vadd.f32 %v389_v46, %v155_v47 }
 0x21e   :  { %v165_v50 = vpack.c.bf16 %v164_v49, %v163_v48 }
 0x220   :  { %430 = vmatmul.mubr.msk.bf16.vlgmr.msra.gmra.mrb[4].mxu1 %vm69_vm1, %v165_v50 }
 0x2f3   :  { %v226_v54 = vpop.f32.mrb[4].mxu1 }
 0x2f4   :  { %v227_v55 = vadd.f32 %v390_v53, %v226_v54  ;;  %v431_v56 = vpop.f32.mrb[5].mxu1 }
 0x2f5   :  { %v229_v57 = vpop.f32.mrb[6].mxu1 }
 0x2f6   :  { %v230_v58 = vadd.f32 %v390_v53, %v229_v57  ;;  %v432_v59 = vpop.f32.mrb[7].mxu1  ;;  %v233_v60 = vmax.f32 %v227_v55, 0.0 }
 0x2f8   :  { %v234_v61 = vmax.f32 %v230_v58, 0.0 }
 0x2fa   :  { %v235_v62 = vpack.c.bf16 %v234_v61, %v233_v60 }
 0x2fc   :  { %442 = vmatmul.mubr.msk.bf16.vlgmr.msra.gmra.mrb[0].mxu0 %vm275_vm2, %v235_v62 }
 0x3cf   :  { %v313_v0 = vpop.f32.mrb[0].mxu0 }
 0x3d0   :  { %v314_v1 = vadd.f32 %v394_v63, %v313_v0  ;;  %v443_v2 = vpop.f32.mrb[1].mxu0 }
 0x3d1   :  { %v316_v3 = vpop.f32.mrb[2].mxu0 }
 0x3d2   :  { %v317_v4 = vadd.f32 %v394_v63, %v316_v3  ;;  %v444_v5 = vpop.f32.mrb[3].mxu0  ;;  %v320_v6 = vadd.f32 %v314_v1, %v163_v48 }
 0x3d4   :  { %v322_v7 = vsel %vm69_vm1, %v320_v6, 0.0  ;;  %v321_v8 = vadd.f32 %v317_v4, %v164_v49 }
 0x3d5   :  { %323 = vadd.xlane.f32.xlu0 %v322_v7 }
 0x3d6   :  { %v325_v9 = vsel %vm69_vm1, %v321_v8, 0.0 }
 0x3d7   :  { %326 = vadd.xlane.f32.xlu1 %v325_v9 }
 0x462   :  { %v324_v10 = vpop.xlane.xlu0 %323 }
 0x463   :  { %v328_v11 = vmul.f32 0.03125, %v324_v10 }
 0x464   :  { %v327_v12 = vpop.xlane.xlu1 %326 }
 0x465   :  { %v330_v13 = vsub.f32 %v320_v6, %v328_v11  ;;  %v329_v14 = vmul.f32 0.03125, %v327_v12 }
 0x467   :  { %v331_v15 = vsub.f32 %v321_v8, %v329_v14  ;;  %v332_v16 = vmul.f32 %v330_v13, %v330_v13 }
 0x469   :  { %v334_v17 = vsel %vm69_vm1, %v332_v16, 0.0  ;;  %v333_v18 = vmul.f32 %v331_v15, %v331_v15 }
 0x46a   :  { %335 = vadd.xlane.f32.xlu0 %v334_v17 }
 0x46b   :  { %v337_v19 = vsel %vm69_vm1, %v333_v18, 0.0 }
 0x46c   :  { %338 = vadd.xlane.f32.xlu1 %v337_v19 }
 0x4f7   :  { %v336_v20 = vpop.xlane.xlu0 %335 }
 0x4f8   :  { %v340_v21 = vmul.f32 0.03125, %v336_v20 }
 0x4f9   :  { %v339_v22 = vpop.xlane.xlu1 %338 }
 0x4fa   :  { %v342_v23 = vadd.f32 1e-05, %v340_v21  ;;  %v341_v24 = vmul.f32 0.03125, %v339_v22 }
 0x4fc   :  { %462 = vrsqrt.f32 %v342_v23  ;;  %v343_v25 = vadd.f32 1e-05, %v341_v24 }
 0x4fe   :  { %464 = vrsqrt.f32 %v343_v25 }
 0x506   :  { %v463_v26 = vpop.eup %462 }
 0x507   :  { %v346_v28 = vmul.f32 %v463_v26, %v330_v13 }
 0x508   :  { %v465_v29 = vpop.eup %464 }
 0x509   :  { %v347_v31 = vmul.f32 %v465_v29, %v331_v15  ;;  %v355_v32 = vmul.f32 %v400_v27, %v346_v28 }
 0x50b   :  { %v356_v33 = vmul.f32 %v400_v27, %v347_v31  ;;  %v364_v34 = vadd.f32 %v401_v30, %v355_v32 }
 0x50d   :  { %v365_v35 = vadd.f32 %v401_v30, %v356_v33  ;;  %366 = vst.msk [vmem:[#allocation2] sm:$0xff] %vm69_vm1, %v364_v34 }
 0x50f   :  { %367 = vst.msk [vmem:[#allocation2 + $0x8] sm:$0xff] %vm69_vm1, %v365_v35 }
 0x510   :  { %477 = shalt.err (!%p474_p4)
}
 0x511   :  { %s478_s0 = scalar_lea.hbm %s661_s12, 256 }
 0x512   :  { %p479_p5 = scmp.ne.s32.totalorder %s661_s12, %s478_s0  ;;  %p482_p6 = scmp.lt.u32.totalorder %s478_s0, %s661_s12 }
 0x514   :  { %p484_p7 = pnand %p482_p6, %p479_p5 }
 0x516   :  { %487 = shalt.err (!%p484_p7)
}
 0x517   :  { %s493_s15 = smov 128   ;;  %s494_s16 = smov 8  }
 0x518   :  { %379 = dma.vmem_to_hbm [thread:$0]  %s374_s29, 256, %s661_s12, [#allocation3], %s493_s15, %s493_s15, %s494_s16  }
 0x519   :  { %488 = dma.done.wait [#allocation3], 256  }
 0x51a   :  { %489 = vsyncadd [#allocation3], 4294967040 }
 0x51b   :  { %383 = vsyncpa [#allocation3], 1 }

</bundles_post_ra>
